<compile_context>
chip_gen: v7x
topology: tpu7x:2x2x1
jax: 0.10.0
libtpu: 0.0.40
codegen_flags: <defaults>
</compile_context>

<pallas_src>
import functools

import numpy as np

import jax
import jax.numpy as jnp
from jax.experimental import pallas as pl
from jax.experimental.pallas import tpu as pltpu

HEATMAP_CHANNELS = 17
STEM_CHANNELS = 32

# normalization constants from TrtHrnet.__init__
MEAN3 = jnp.array((-0.485 * 255.0, -0.456 * 255.0, -0.406 * 255.0), jnp.float32)
STD3 = jnp.array((1.0 / (0.229 * 255.0), 1.0 / (0.224 * 255.0), 1.0 / (0.225 * 255.0)),
                 jnp.float32)

_VMEM_LIMIT = 32 * 1024 * 1024


# ----------------------------- Pallas kernels ------------------------------

def _conv_core(x_even, x_odd, band_ref, bias_ref, o_ref, relu):
    # Row taps for output row oh (stride 2, pad 1):
    #   kh=0 -> input row 2*oh-1  == x_odd[oh-1]  (zeros for oh==0: top padding)
    #   kh=1 -> input row 2*oh    == x_even[oh]
    #   kh=2 -> input row 2*oh+1  == x_odd[oh]
    row0 = pltpu.roll(x_odd, shift=1, axis=0)
    not_first = jax.lax.broadcasted_iota(jnp.int32, row0.shape, 0) >= 1
    row0 = jnp.where(not_first, row0, 0.0)

    acc = jnp.dot(row0, band_ref[0], preferred_element_type=jnp.float32)
    acc = acc + jnp.dot(x_even, band_ref[1], preferred_element_type=jnp.float32)
    acc = acc + jnp.dot(x_odd, band_ref[2], preferred_element_type=jnp.float32)
    acc = acc + bias_ref[...]
    if relu:
        acc = jnp.maximum(acc, 0.0)
    o_ref[0] = acc                                   # lane-dense (Ho, Wo*Cout) store


def _conv3x3_s2_kernel(x_ref, band_ref, bias_ref, o_ref, *, relu):
    # x_ref block: (1, H/2, 2, W*Cin) — even/odd row planes of one image.
    x_even = x_ref[0, :, 0, :]
    x_odd = x_ref[0, :, 1, :]
    _conv_core(x_even, x_odd, band_ref, bias_ref, o_ref, relu)


def _conv3x3_s2_norm_kernel(x_ref, band_ref, bias_ref, mean_ref, std_ref, o_ref, *, relu):
    # Fused preprocessing: x = (x + mean) * std (same op order as torch), applied to
    # the raw image tile so the implicit zero padding stays exactly zero.
    x_even = (x_ref[0, :, 0, :] + mean_ref[...]) * std_ref[...]
    x_odd = (x_ref[0, :, 1, :] + mean_ref[...]) * std_ref[...]
    _conv_core(x_even, x_odd, band_ref, bias_ref, o_ref, relu)


def _head_topk_kernel(x_ref, w_ref, b_ref, val_ref, idx_ref):
    # Fused 1x1 head conv + channel-major flatten + torch.topk(x, 1, dim=2).
    feats = x_ref[0]                                               # (S, C)
    heat = jnp.dot(feats, w_ref[...], preferred_element_type=jnp.float32) + b_ref[...]
    vmax = jnp.max(heat, axis=0, keepdims=True)                    # (1, 17)
    spos = jax.lax.broadcasted_iota(jnp.int32, heat.shape, 0)      # s = h*Wh + w
    # torch.topk tie order is unspecified; we return the first (lowest) max index.
    imax = jnp.min(jnp.where(heat == vmax, spos, heat.shape[0]), axis=0, keepdims=True)
    val_ref[0] = vmax
    idx_ref[0] = imax.astype(jnp.float32)                          # idx = idx.float()


# ------------------------------ wrappers -----------------------------------

def conv3x3_s2(x, w_hwio, bias, *, relu, norm=None):
    """3x3, stride-2, pad-1 conv (+ optional fused normalization, + ReLU).

    Returns the output lane-dense as (N, Ho, Wo*Cout)."""
    n, h, w, cin = x.shape
    kh_, kw_, cin_w, cout = w_hwio.shape
    assert (kh_, kw_) == (3, 3) and cin_w == cin and h % 2 == 0 and w % 2 == 0
    ho, wo = h // 2, w // 2
    w_cin = w * cin
    wo_cout = wo * cout

    # Banded weight: fold the kw taps and W-edge zero padding into (W*Cin, Wo*Cout)
    # matrices, one per kh, so the kernel only does unit-stride loads + matmuls.
    sel = np.zeros((3, w, wo), np.float32)
    for kw in range(3):
        for ow in range(wo):
            wu = 2 * ow + kw - 1
            if 0 <= wu < w:
                sel[kw, wu, ow] = 1.0
    band = jnp.einsum("kwo,hkic->hwioc", jnp.asarray(sel), w_hwio)
    band = band.reshape(3, w_cin, wo_cout)
    bias_row = jnp.tile(bias, wo).reshape(1, wo_cout)

    # Free (contiguous) reshape: de-interleave rows into (even, odd) planes.
    x_r = x.reshape(n, ho, 2, w_cin)

    args = [x_r, band, bias_row]
    in_specs = [
        pl.BlockSpec((1, ho, 2, w_cin), lambda i: (i, 0, 0, 0)),
        pl.BlockSpec((3, w_cin, wo_cout), lambda i: (0, 0, 0)),   # resident weights
        pl.BlockSpec((1, wo_cout), lambda i: (0, 0)),             # resident bias
    ]
    if norm is not None:
        mean3, std3 = norm
        mean_row = jnp.tile(mean3, w).reshape(1, w_cin)
        std_row = jnp.tile(std3, w).reshape(1, w_cin)
        args += [mean_row, std_row]
        in_specs += [pl.BlockSpec((1, w_cin), lambda i: (0, 0)),
                     pl.BlockSpec((1, w_cin), lambda i: (0, 0))]
        kernel = functools.partial(_conv3x3_s2_norm_kernel, relu=relu)
    else:
        kernel = functools.partial(_conv3x3_s2_kernel, relu=relu)

    flops = 2 * n * ho * wo * 9 * cin * cout
    bytes_accessed = 4 * (x_r.size + band.size + bias_row.size + n * ho * wo_cout)
    return pl.pallas_call(
        kernel,
        out_shape=jax.ShapeDtypeStruct((n, ho, wo_cout), jnp.float32),
        grid=(n,),
        in_specs=in_specs,
        out_specs=pl.BlockSpec((1, ho, wo_cout), lambda i: (i, 0, 0)),
        compiler_params=pltpu.CompilerParams(
            dimension_semantics=("parallel",),
            vmem_limit_bytes=_VMEM_LIMIT),
        cost_estimate=pl.CostEstimate(
            flops=flops, transcendentals=0, bytes_accessed=bytes_accessed),
    )(*args)


def head_topk(feats, w_head, b_head):
    """Fused 1x1 heatmap head + per-channel top-1 (value, index)."""
    n, s, c = feats.shape
    k = w_head.shape[-1]
    return pl.pallas_call(
        _head_topk_kernel,
        out_shape=(jax.ShapeDtypeStruct((n, 1, k), jnp.float32),
                   jax.ShapeDtypeStruct((n, 1, k), jnp.float32)),
        grid=(n,),
        in_specs=[pl.BlockSpec((1, s, c), lambda i: (i, 0, 0)),
                  pl.BlockSpec((c, k), lambda i: (0, 0)),          # resident weights
                  pl.BlockSpec((1, k), lambda i: (0, 0))],         # resident bias
        out_specs=(pl.BlockSpec((1, 1, k), lambda i: (i, 0, 0)),
                   pl.BlockSpec((1, 1, k), lambda i: (i, 0, 0))),
        compiler_params=pltpu.CompilerParams(
            dimension_semantics=("parallel",),
            vmem_limit_bytes=_VMEM_LIMIT),
        cost_estimate=pl.CostEstimate(
            flops=2 * n * s * c * k, transcendentals=0,
            bytes_accessed=4 * (n * s * c + c * k + k + 2 * n * k)),
    )(feats, w_head, b_head)


# ------------------------- model parameters / forward ----------------------

def init_params(key):
    k1, k2, k3, k4, k5, k6 = jax.random.split(key, 6)
    return {
        "conv1_w": 0.05 * jax.random.normal(k1, (3, 3, 3, STEM_CHANNELS), jnp.float32),
        "conv1_b": 0.01 * jax.random.normal(k2, (STEM_CHANNELS,), jnp.float32),
        "conv2_w": 0.05 * jax.random.normal(k3, (3, 3, STEM_CHANNELS, STEM_CHANNELS), jnp.float32),
        "conv2_b": 0.01 * jax.random.normal(k4, (STEM_CHANNELS,), jnp.float32),
        "head_w": 0.05 * jax.random.normal(k5, (1, 1, STEM_CHANNELS, HEATMAP_CHANNELS), jnp.float32),
        "head_b": 0.01 * jax.random.normal(k6, (HEATMAP_CHANNELS,), jnp.float32),
    }


def trt_hrnet_forward(params, x):
    n, h, w, _ = x.shape
    # conv1: normalization (x+mean)*std fused into the conv input load.
    y = conv3x3_s2(x, params["conv1_w"], params["conv1_b"], relu=True, norm=(MEAN3, STD3))
    y = y.reshape(n, h // 2, w // 2, STEM_CHANNELS)
    y = conv3x3_s2(y, params["conv2_w"], params["conv2_b"], relu=True, norm=None)
    hh, wh = h // 4, w // 4
    feats = y.reshape(n, hh * wh, STEM_CHANNELS)
    # Fused 1x1 head + (N,17,Hh*Wh) flatten + top-1; index convention = oh*Wh + ow,
    # identical to torch's NCHW reshape.
    val, idx = head_topk(feats,
                         params["head_w"].reshape(STEM_CHANNELS, HEATMAP_CHANNELS),
                         params["head_b"].reshape(1, HEATMAP_CHANNELS))
    return (val.reshape(n, HEATMAP_CHANNELS, 1),
            idx.reshape(n, HEATMAP_CHANNELS, 1))


# ------------------------------ reference ----------------------------------

def _reference_forward(params, x):
    """Pure-JAX reference matching the PyTorch forward semantics."""
    dn = ("NHWC", "HWIO", "NHWC")
    hp = jax.lax.Precision.HIGHEST
    y = (x + MEAN3) * STD3
    y = jax.lax.conv_general_dilated(y, params["conv1_w"], (2, 2), ((1, 1), (1, 1)),
                                     dimension_numbers=dn, precision=hp)
    y = jax.nn.relu(y + params["conv1_b"])
    y = jax.lax.conv_general_dilated(y, params["conv2_w"], (2, 2), ((1, 1), (1, 1)),
                                     dimension_numbers=dn, precision=hp)
    y = jax.nn.relu(y + params["conv2_b"])
    y = jax.lax.conv_general_dilated(y, params["head_w"], (1, 1), ((0, 0), (0, 0)),
                                     dimension_numbers=dn, precision=hp)
    y = y + params["head_b"]
    n, hh, wh, c = y.shape
    heat = jnp.transpose(y, (0, 3, 1, 2)).reshape(n, c, hh * wh)
    val = jnp.max(heat, axis=2, keepdims=True)
    return val, heat


if __name__ == "__main__":
    key = jax.random.PRNGKey(0)
    pkey, xkey = jax.random.split(key)
    params = init_params(pkey)
    # small NHWC image batch, pixel values in [0, 255) like the real pipeline
    x = jax.random.uniform(xkey, (2, 16, 16, 3), jnp.float32, 0.0, 255.0)

    val, idx = jax.jit(trt_hrnet_forward)(params, x)
    jax.block_until_ready((val, idx))

    assert val.shape == (2, HEATMAP_CHANNELS, 1)
    assert idx.shape == (2, HEATMAP_CHANNELS, 1)
    assert idx.dtype == jnp.float32

    # Correctness check against the pure-JAX reference.
    ref_val, ref_heat = _reference_forward(params, x)
    assert jnp.allclose(val, ref_val, atol=2e-2, rtol=2e-2)
    # Index check robust to near-ties: the reported location must attain the max.
    picked = jnp.take_along_axis(ref_heat, idx.astype(jnp.int32), axis=2)
    assert jnp.allclose(picked, ref_val, atol=2e-2, rtol=2e-2)

    print("KERNEL_OK")
</pallas_src>

<mosaic_0001>
module attributes {stable_mosaic.version = 11 : i64} {
  func.func @_conv3x3_s2_norm_kernel(%arg0: i32, %arg1: memref<1x8x2x48xf32, #tpu.memory_space<vmem>>, %arg2: memref<3x48x256xf32, #tpu.memory_space<vmem>>, %arg3: memref<1x256xf32, #tpu.memory_space<vmem>>, %arg4: memref<1x48xf32, #tpu.memory_space<vmem>>, %arg5: memref<1x48xf32, #tpu.memory_space<vmem>>, %arg6: memref<1x8x256xf32, #tpu.memory_space<vmem>>) attributes {dimension_semantics = [#tpu.dimension_semantics<parallel>], iteration_bounds = array<i64: 2>, scalar_prefetch = 0 : i64, scratch_operands = 0 : i64, tpu.core_type = #tpu.core_type<tc>, window_params = [{transform_indices = @transform_0, window_bounds = array<i64: 1, 8, 2, 48>}, {pipeline_mode = #tpu.pipeline_mode<synchronous>, transform_indices = @transform_1, window_bounds = array<i64: 3, 48, 256>}, {pipeline_mode = #tpu.pipeline_mode<synchronous>, transform_indices = @transform_2, window_bounds = array<i64: 1, 256>}, {pipeline_mode = #tpu.pipeline_mode<synchronous>, transform_indices = @transform_3, window_bounds = array<i64: 1, 48>}, {pipeline_mode = #tpu.pipeline_mode<synchronous>, transform_indices = @transform_4, window_bounds = array<i64: 1, 48>}, {transform_indices = @transform_5, window_bounds = array<i64: 1, 8, 256>}]} {
    %c0 = arith.constant 0 : index
    %c0_0 = arith.constant 0 : index
    %c0_1 = arith.constant 0 : index
    %c0_2 = arith.constant 0 : index
    %0 = vector.load %arg1[%c0, %c0_0, %c0_1, %c0_2] : memref<1x8x2x48xf32, #tpu.memory_space<vmem>>, vector<1x8x1x48xf32>
    %1 = vector.shape_cast %0 : vector<1x8x1x48xf32> to vector<8x48xf32>
    %c0_3 = arith.constant 0 : index
    %c0_4 = arith.constant 0 : index
    %2 = vector.load %arg4[%c0_3, %c0_4] : memref<1x48xf32, #tpu.memory_space<vmem>>, vector<1x48xf32>
    %3 = vector.broadcast %2 : vector<1x48xf32> to vector<8x48xf32>
    %4 = arith.addf %1, %3 : vector<8x48xf32>
    %c0_5 = arith.constant 0 : index
    %c0_6 = arith.constant 0 : index
    %5 = vector.load %arg5[%c0_5, %c0_6] : memref<1x48xf32, #tpu.memory_space<vmem>>, vector<1x48xf32>
    %6 = vector.broadcast %5 : vector<1x48xf32> to vector<8x48xf32>
    %7 = arith.mulf %4, %6 : vector<8x48xf32>
    %c0_7 = arith.constant 0 : index
    %c0_8 = arith.constant 0 : index
    %c1 = arith.constant 1 : index
    %c0_9 = arith.constant 0 : index
    %8 = vector.load %arg1[%c0_7, %c0_8, %c1, %c0_9] : memref<1x8x2x48xf32, #tpu.memory_space<vmem>>, vector<1x8x1x48xf32>
    %9 = vector.shape_cast %8 : vector<1x8x1x48xf32> to vector<8x48xf32>
    %c0_10 = arith.constant 0 : index
    %c0_11 = arith.constant 0 : index
    %10 = vector.load %arg4[%c0_10, %c0_11] : memref<1x48xf32, #tpu.memory_space<vmem>>, vector<1x48xf32>
    %11 = vector.broadcast %10 : vector<1x48xf32> to vector<8x48xf32>
    %12 = arith.addf %9, %11 : vector<8x48xf32>
    %c0_12 = arith.constant 0 : index
    %c0_13 = arith.constant 0 : index
    %13 = vector.load %arg5[%c0_12, %c0_13] : memref<1x48xf32, #tpu.memory_space<vmem>>, vector<1x48xf32>
    %14 = vector.broadcast %13 : vector<1x48xf32> to vector<8x48xf32>
    %15 = arith.mulf %12, %14 : vector<8x48xf32>
    %c1_i32 = arith.constant 1 : i32
    %16 = tpu.dynamic_rotate %15 by %c1_i32 dim 0 : vector<8x48xf32>, i32 -> vector<8x48xf32>
    %17 = tpu.iota {dimensions = array<i32: 0>} : vector<8x48xi32>
    %c1_i32_14 = arith.constant 1 : i32
    %18 = vector.broadcast %c1_i32_14 : i32 to vector<8x48xi32>
    %19 = arith.cmpi sge, %17, %18 : vector<8x48xi32>
    %cst = arith.constant 0.000000e+00 : f32
    %20 = vector.broadcast %cst : f32 to vector<8x48xf32>
    %21 = arith.select %19, %16, %20 : vector<8x48xi1>, vector<8x48xf32>
    %c0_15 = arith.constant 0 : index
    %c0_16 = arith.constant 0 : index
    %c0_17 = arith.constant 0 : index
    %22 = vector.load %arg2[%c0_15, %c0_16, %c0_17] : memref<3x48x256xf32, #tpu.memory_space<vmem>>, vector<1x48x256xf32>
    %23 = vector.shape_cast %22 : vector<1x48x256xf32> to vector<48x256xf32>
    %cst_18 = arith.constant dense<0.000000e+00> : vector<8x256xf32>
    %24 = tpu.matmul %21, %23, %cst_18 {dimension_numbers = #tpu.dot_dimension_numbers<[1], [0], [0], [1], [0, 0, 1, 1], [], []>} : vector<8x48xf32>, vector<48x256xf32>, vector<8x256xf32> -> vector<8x256xf32>
    %c1_19 = arith.constant 1 : index
    %c0_20 = arith.constant 0 : index
    %c0_21 = arith.constant 0 : index
    %25 = vector.load %arg2[%c1_19, %c0_20, %c0_21] : memref<3x48x256xf32, #tpu.memory_space<vmem>>, vector<1x48x256xf32>
    %26 = vector.shape_cast %25 : vector<1x48x256xf32> to vector<48x256xf32>
    %cst_22 = arith.constant dense<0.000000e+00> : vector<8x256xf32>
    %27 = tpu.matmul %7, %26, %cst_22 {dimension_numbers = #tpu.dot_dimension_numbers<[1], [0], [0], [1], [0, 0, 1, 1], [], []>} : vector<8x48xf32>, vector<48x256xf32>, vector<8x256xf32> -> vector<8x256xf32>
    %28 = arith.addf %24, %27 : vector<8x256xf32>
    %c2 = arith.constant 2 : index
    %c0_23 = arith.constant 0 : index
    %c0_24 = arith.constant 0 : index
    %29 = vector.load %arg2[%c2, %c0_23, %c0_24] : memref<3x48x256xf32, #tpu.memory_space<vmem>>, vector<1x48x256xf32>
    %30 = vector.shape_cast %29 : vector<1x48x256xf32> to vector<48x256xf32>
    %cst_25 = arith.constant dense<0.000000e+00> : vector<8x256xf32>
    %31 = tpu.matmul %15, %30, %cst_25 {dimension_numbers = #tpu.dot_dimension_numbers<[1], [0], [0], [1], [0, 0, 1, 1], [], []>} : vector<8x48xf32>, vector<48x256xf32>, vector<8x256xf32> -> vector<8x256xf32>
    %32 = arith.addf %28, %31 : vector<8x256xf32>
    %c0_26 = arith.constant 0 : index
    %c0_27 = arith.constant 0 : index
    %33 = vector.load %arg3[%c0_26, %c0_27] : memref<1x256xf32, #tpu.memory_space<vmem>>, vector<1x256xf32>
    %34 = vector.broadcast %33 : vector<1x256xf32> to vector<8x256xf32>
    %35 = arith.addf %32, %34 : vector<8x256xf32>
    %cst_28 = arith.constant 0.000000e+00 : f32
    %36 = vector.broadcast %cst_28 : f32 to vector<8x256xf32>
    %37 = arith.maximumf %35, %36 : vector<8x256xf32>
    %c0_29 = arith.constant 0 : index
    %c0_30 = arith.constant 0 : index
    %c0_31 = arith.constant 0 : index
    %38 = vector.load %arg6[%c0_29, %c0_30, %c0_31] : memref<1x8x256xf32, #tpu.memory_space<vmem>>, vector<1x8x256xf32>
    %39 = vector.shape_cast %38 : vector<1x8x256xf32> to vector<8x256xf32>
    %40 = vector.shape_cast %37 : vector<8x256xf32> to vector<1x8x256xf32>
    tpu.vector_store %arg6[%c0_29, %c0_30, %c0_31], %40 {strides = array<i32>} : memref<1x8x256xf32, #tpu.memory_space<vmem>>, vector<1x8x256xf32>,
    return
  }
  func.func @transform_0(%arg0: i32) -> (i32, i32, i32, i32) {
    %c0_i32 = arith.constant 0 : i32
    %c0_i32_0 = arith.constant 0 : i32
    %c0_i32_1 = arith.constant 0 : i32
    %c0_i32_2 = arith.constant 0 : i32
    return %arg0, %c0_i32, %c0_i32_0, %c0_i32_1 : i32, i32, i32, i32
  }
  func.func @transform_1(%arg0: i32) -> (i32, i32, i32) {
    %c0_i32 = arith.constant 0 : i32
    %c0_i32_0 = arith.constant 0 : i32
    %c0_i32_1 = arith.constant 0 : i32
    %c0_i32_2 = arith.constant 0 : i32
    return %c0_i32, %c0_i32_0, %c0_i32_1 : i32, i32, i32
  }
  func.func @transform_2(%arg0: i32) -> (i32, i32) {
    %c0_i32 = arith.constant 0 : i32
    %c0_i32_0 = arith.constant 0 : i32
    %c0_i32_1 = arith.constant 0 : i32
    return %c0_i32, %c0_i32_0 : i32, i32
  }
  func.func @transform_3(%arg0: i32) -> (i32, i32) {
    %c0_i32 = arith.constant 0 : i32
    %c0_i32_0 = arith.constant 0 : i32
    %c0_i32_1 = arith.constant 0 : i32
    return %c0_i32, %c0_i32_0 : i32, i32
  }
  func.func @transform_4(%arg0: i32) -> (i32, i32) {
    %c0_i32 = arith.constant 0 : i32
    %c0_i32_0 = arith.constant 0 : i32
    %c0_i32_1 = arith.constant 0 : i32
    return %c0_i32, %c0_i32_0 : i32, i32
  }
  func.func @transform_5(%arg0: i32) -> (i32, i32, i32) {
    %c0_i32 = arith.constant 0 : i32
    %c0_i32_0 = arith.constant 0 : i32
    %c0_i32_1 = arith.constant 0 : i32
    return %arg0, %c0_i32, %c0_i32_0 : i32, i32, i32
  }
}

module attributes {stable_mosaic.version = 11 : i64} {
  func.func @_conv3x3_s2_kernel(%arg0: i32, %arg1: memref<1x4x2x256xf32, #tpu.memory_space<vmem>>, %arg2: memref<3x256x128xf32, #tpu.memory_space<vmem>>, %arg3: memref<1x128xf32, #tpu.memory_space<vmem>>, %arg4: memref<1x4x128xf32, #tpu.memory_space<vmem>>) attributes {dimension_semantics = [#tpu.dimension_semantics<parallel>], iteration_bounds = array<i64: 2>, scalar_prefetch = 0 : i64, scratch_operands = 0 : i64, tpu.core_type = #tpu.core_type<tc>, window_params = [{transform_indices = @transform_0, window_bounds = array<i64: 1, 4, 2, 256>}, {pipeline_mode = #tpu.pipeline_mode<synchronous>, transform_indices = @transform_1, window_bounds = array<i64: 3, 256, 128>}, {pipeline_mode = #tpu.pipeline_mode<synchronous>, transform_indices = @transform_2, window_bounds = array<i64: 1, 128>}, {transform_indices = @transform_3, window_bounds = array<i64: 1, 4, 128>}]} {
    %c0 = arith.constant 0 : index
    %c0_0 = arith.constant 0 : index
    %c0_1 = arith.constant 0 : index
    %c0_2 = arith.constant 0 : index
    %0 = vector.load %arg1[%c0, %c0_0, %c0_1, %c0_2] : memref<1x4x2x256xf32, #tpu.memory_space<vmem>>, vector<1x4x1x256xf32>
    %1 = vector.shape_cast %0 : vector<1x4x1x256xf32> to vector<4x256xf32>
    %c0_3 = arith.constant 0 : index
    %c0_4 = arith.constant 0 : index
    %c1 = arith.constant 1 : index
    %c0_5 = arith.constant 0 : index
    %2 = vector.load %arg1[%c0_3, %c0_4, %c1, %c0_5] : memref<1x4x2x256xf32, #tpu.memory_space<vmem>>, vector<1x4x1x256xf32>
    %3 = vector.shape_cast %2 : vector<1x4x1x256xf32> to vector<4x256xf32>
    %c1_i32 = arith.constant 1 : i32
    %4 = tpu.dynamic_rotate %3 by %c1_i32 dim 0 : vector<4x256xf32>, i32 -> vector<4x256xf32>
    %5 = tpu.iota {dimensions = array<i32: 0>} : vector<4x256xi32>
    %c1_i32_6 = arith.constant 1 : i32
    %6 = vector.broadcast %c1_i32_6 : i32 to vector<4x256xi32>
    %7 = arith.cmpi sge, %5, %6 : vector<4x256xi32>
    %cst = arith.constant 0.000000e+00 : f32
    %8 = vector.broadcast %cst : f32 to vector<4x256xf32>
    %9 = arith.select %7, %4, %8 : vector<4x256xi1>, vector<4x256xf32>
    %c0_7 = arith.constant 0 : index
    %c0_8 = arith.constant 0 : index
    %c0_9 = arith.constant 0 : index
    %10 = vector.load %arg2[%c0_7, %c0_8, %c0_9] : memref<3x256x128xf32, #tpu.memory_space<vmem>>, vector<1x256x128xf32>
    %11 = vector.shape_cast %10 : vector<1x256x128xf32> to vector<256x128xf32>
    %cst_10 = arith.constant dense<0.000000e+00> : vector<4x128xf32>
    %12 = tpu.matmul %9, %11, %cst_10 {dimension_numbers = #tpu.dot_dimension_numbers<[1], [0], [0], [1], [0, 0, 1, 1], [], []>} : vector<4x256xf32>, vector<256x128xf32>, vector<4x128xf32> -> vector<4x128xf32>
    %c1_11 = arith.constant 1 : index
    %c0_12 = arith.constant 0 : index
    %c0_13 = arith.constant 0 : index
    %13 = vector.load %arg2[%c1_11, %c0_12, %c0_13] : memref<3x256x128xf32, #tpu.memory_space<vmem>>, vector<1x256x128xf32>
    %14 = vector.shape_cast %13 : vector<1x256x128xf32> to vector<256x128xf32>
    %cst_14 = arith.constant dense<0.000000e+00> : vector<4x128xf32>
    %15 = tpu.matmul %1, %14, %cst_14 {dimension_numbers = #tpu.dot_dimension_numbers<[1], [0], [0], [1], [0, 0, 1, 1], [], []>} : vector<4x256xf32>, vector<256x128xf32>, vector<4x128xf32> -> vector<4x128xf32>
    %16 = arith.addf %12, %15 : vector<4x128xf32>
    %c2 = arith.constant 2 : index
    %c0_15 = arith.constant 0 : index
    %c0_16 = arith.constant 0 : index
    %17 = vector.load %arg2[%c2, %c0_15, %c0_16] : memref<3x256x128xf32, #tpu.memory_space<vmem>>, vector<1x256x128xf32>
    %18 = vector.shape_cast %17 : vector<1x256x128xf32> to vector<256x128xf32>
    %cst_17 = arith.constant dense<0.000000e+00> : vector<4x128xf32>
    %19 = tpu.matmul %3, %18, %cst_17 {dimension_numbers = #tpu.dot_dimension_numbers<[1], [0], [0], [1], [0, 0, 1, 1], [], []>} : vector<4x256xf32>, vector<256x128xf32>, vector<4x128xf32> -> vector<4x128xf32>
    %20 = arith.addf %16, %19 : vector<4x128xf32>
    %c0_18 = arith.constant 0 : index
    %c0_19 = arith.constant 0 : index
    %21 = vector.load %arg3[%c0_18, %c0_19] : memref<1x128xf32, #tpu.memory_space<vmem>>, vector<1x128xf32>
    %22 = vector.broadcast %21 : vector<1x128xf32> to vector<4x128xf32>
    %23 = arith.addf %20, %22 : vector<4x128xf32>
    %cst_20 = arith.constant 0.000000e+00 : f32
    %24 = vector.broadcast %cst_20 : f32 to vector<4x128xf32>
    %25 = arith.maximumf %23, %24 : vector<4x128xf32>
    %c0_21 = arith.constant 0 : index
    %c0_22 = arith.constant 0 : index
    %c0_23 = arith.constant 0 : index
    %26 = vector.load %arg4[%c0_21, %c0_22, %c0_23] : memref<1x4x128xf32, #tpu.memory_space<vmem>>, vector<1x4x128xf32>
    %27 = vector.shape_cast %26 : vector<1x4x128xf32> to vector<4x128xf32>
    %28 = vector.shape_cast %25 : vector<4x128xf32> to vector<1x4x128xf32>
    tpu.vector_store %arg4[%c0_21, %c0_22, %c0_23], %28 {strides = array<i32>} : memref<1x4x128xf32, #tpu.memory_space<vmem>>, vector<1x4x128xf32>,
    return
  }
  func.func @transform_0(%arg0: i32) -> (i32, i32, i32, i32) {
    %c0_i32 = arith.constant 0 : i32
    %c0_i32_0 = arith.constant 0 : i32
    %c0_i32_1 = arith.constant 0 : i32
    %c0_i32_2 = arith.constant 0 : i32
    return %arg0, %c0_i32, %c0_i32_0, %c0_i32_1 : i32, i32, i32, i32
  }
  func.func @transform_1(%arg0: i32) -> (i32, i32, i32) {
    %c0_i32 = arith.constant 0 : i32
    %c0_i32_0 = arith.constant 0 : i32
    %c0_i32_1 = arith.constant 0 : i32
    %c0_i32_2 = arith.constant 0 : i32
    return %c0_i32, %c0_i32_0, %c0_i32_1 : i32, i32, i32
  }
  func.func @transform_2(%arg0: i32) -> (i32, i32) {
    %c0_i32 = arith.constant 0 : i32
    %c0_i32_0 = arith.constant 0 : i32
    %c0_i32_1 = arith.constant 0 : i32
    return %c0_i32, %c0_i32_0 : i32, i32
  }
  func.func @transform_3(%arg0: i32) -> (i32, i32, i32) {
    %c0_i32 = arith.constant 0 : i32
    %c0_i32_0 = arith.constant 0 : i32
    %c0_i32_1 = arith.constant 0 : i32
    return %arg0, %c0_i32, %c0_i32_0 : i32, i32, i32
  }
}

module attributes {stable_mosaic.version = 11 : i64} {
  func.func @_head_topk_kernel(%arg0: i32, %arg1: memref<1x16x32xf32, #tpu.memory_space<vmem>>, %arg2: memref<32x17xf32, #tpu.memory_space<vmem>>, %arg3: memref<1x17xf32, #tpu.memory_space<vmem>>, %arg4: memref<1x1x17xf32, #tpu.memory_space<vmem>>, %arg5: memref<1x1x17xf32, #tpu.memory_space<vmem>>) attributes {dimension_semantics = [#tpu.dimension_semantics<parallel>], iteration_bounds = array<i64: 2>, scalar_prefetch = 0 : i64, scratch_operands = 0 : i64, tpu.core_type = #tpu.core_type<tc>, window_params = [{transform_indices = @transform_0, window_bounds = array<i64: 1, 16, 32>}, {pipeline_mode = #tpu.pipeline_mode<synchronous>, transform_indices = @transform_1, window_bounds = array<i64: 32, 17>}, {pipeline_mode = #tpu.pipeline_mode<synchronous>, transform_indices = @transform_2, window_bounds = array<i64: 1, 17>}, {transform_indices = @transform_3, window_bounds = array<i64: 1, 1, 17>}, {transform_indices = @transform_4, window_bounds = array<i64: 1, 1, 17>}]} {
    %c0 = arith.constant 0 : index
    %c0_0 = arith.constant 0 : index
    %c0_1 = arith.constant 0 : index
    %0 = vector.load %arg1[%c0, %c0_0, %c0_1] : memref<1x16x32xf32, #tpu.memory_space<vmem>>, vector<1x16x32xf32>
    %1 = vector.shape_cast %0 : vector<1x16x32xf32> to vector<16x32xf32>
    %c0_2 = arith.constant 0 : index
    %c0_3 = arith.constant 0 : index
    %2 = vector.load %arg2[%c0_2, %c0_3] : memref<32x17xf32, #tpu.memory_space<vmem>>, vector<32x17xf32>
    %cst = arith.constant dense<0.000000e+00> : vector<16x17xf32>
    %3 = tpu.matmul %1, %2, %cst {dimension_numbers = #tpu.dot_dimension_numbers<[1], [0], [0], [1], [0, 0, 1, 1], [], []>} : vector<16x32xf32>, vector<32x17xf32>, vector<16x17xf32> -> vector<16x17xf32>
    %c0_4 = arith.constant 0 : index
    %c0_5 = arith.constant 0 : index
    %4 = vector.load %arg3[%c0_4, %c0_5] : memref<1x17xf32, #tpu.memory_space<vmem>>, vector<1x17xf32>
    %5 = vector.broadcast %4 : vector<1x17xf32> to vector<16x17xf32>
    %6 = arith.addf %3, %5 : vector<16x17xf32>
    %cst_6 = arith.constant dense<0xFF800000> : vector<17xf32>
    %7 = vector.multi_reduction <maximumf>, %6, %cst_6 [0] : vector<16x17xf32> to vector<17xf32>
    %8 = vector.shape_cast %7 : vector<17xf32> to vector<1x17xf32>
    %9 = tpu.iota {dimensions = array<i32: 0>} : vector<16x17xi32>
    %10 = vector.broadcast %8 : vector<1x17xf32> to vector<16x17xf32>
    %11 = arith.cmpf oeq, %6, %10 : vector<16x17xf32>
    %c16_i32 = arith.constant 16 : i32
    %12 = vector.broadcast %c16_i32 : i32 to vector<16x17xi32>
    %13 = arith.select %11, %9, %12 : vector<16x17xi1>, vector<16x17xi32>
    %cst_7 = arith.constant dense<2147483647> : vector<17xi32>
    %14 = vector.multi_reduction <minsi>, %13, %cst_7 [0] : vector<16x17xi32> to vector<17xi32>
    %15 = vector.shape_cast %14 : vector<17xi32> to vector<1x17xi32>
    %c0_8 = arith.constant 0 : index
    %c0_9 = arith.constant 0 : index
    %c0_10 = arith.constant 0 : index
    %16 = vector.load %arg4[%c0_8, %c0_9, %c0_10] : memref<1x1x17xf32, #tpu.memory_space<vmem>>, vector<1x1x17xf32>
    %17 = vector.shape_cast %16 : vector<1x1x17xf32> to vector<1x17xf32>
    %18 = vector.shape_cast %8 : vector<1x17xf32> to vector<1x1x17xf32>
    tpu.vector_store %arg4[%c0_8, %c0_9, %c0_10], %18 {strides = array<i32>} : memref<1x1x17xf32, #tpu.memory_space<vmem>>, vector<1x1x17xf32>,
    %19 = arith.sitofp %15 : vector<1x17xi32> to vector<1x17xf32>
    %c0_11 = arith.constant 0 : index
    %c0_12 = arith.constant 0 : index
    %c0_13 = arith.constant 0 : index
    %20 = vector.load %arg5[%c0_11, %c0_12, %c0_13] : memref<1x1x17xf32, #tpu.memory_space<vmem>>, vector<1x1x17xf32>
    %21 = vector.shape_cast %20 : vector<1x1x17xf32> to vector<1x17xf32>
    %22 = vector.shape_cast %19 : vector<1x17xf32> to vector<1x1x17xf32>
    tpu.vector_store %arg5[%c0_11, %c0_12, %c0_13], %22 {strides = array<i32>} : memref<1x1x17xf32, #tpu.memory_space<vmem>>, vector<1x1x17xf32>,
    return
  }
  func.func @transform_0(%arg0: i32) -> (i32, i32, i32) {
    %c0_i32 = arith.constant 0 : i32
    %c0_i32_0 = arith.constant 0 : i32
    %c0_i32_1 = arith.constant 0 : i32
    return %arg0, %c0_i32, %c0_i32_0 : i32, i32, i32
  }
  func.func @transform_1(%arg0: i32) -> (i32, i32) {
    %c0_i32 = arith.constant 0 : i32
    %c0_i32_0 = arith.constant 0 : i32
    %c0_i32_1 = arith.constant 0 : i32
    return %c0_i32, %c0_i32_0 : i32, i32
  }
  func.func @transform_2(%arg0: i32) -> (i32, i32) {
    %c0_i32 = arith.constant 0 : i32
    %c0_i32_0 = arith.constant 0 : i32
    %c0_i32_1 = arith.constant 0 : i32
    return %c0_i32, %c0_i32_0 : i32, i32
  }
  func.func @transform_3(%arg0: i32) -> (i32, i32, i32) {
    %c0_i32 = arith.constant 0 : i32
    %c0_i32_0 = arith.constant 0 : i32
    %c0_i32_1 = arith.constant 0 : i32
    return %arg0, %c0_i32, %c0_i32_0 : i32, i32, i32
  }
  func.func @transform_4(%arg0: i32) -> (i32, i32, i32) {
    %c0_i32 = arith.constant 0 : i32
    %c0_i32_0 = arith.constant 0 : i32
    %c0_i32_1 = arith.constant 0 : i32
    return %arg0, %c0_i32, %c0_i32_0 : i32, i32, i32
  }
}

</mosaic_0001>

<bundles_post_ra>
// kernel: tile.25
= control target key start
LH: loop header
LB: loop body
LE: loop exit
PB: predicated region body
PF: predicated region fallthrough
CT: control target
= control target key end

     0   :  { %s28_s0 = inlined_call_operand.vmem [shape: f32[3], index: 0, kind: input, shape index: {}]   ;;  %s29_s1 = inlined_call_operand.vmem [shape: f32[16,3], index: 1, kind: output, shape index: {}]  }
   0x1   :  { %v4_v0 = vld [vmem:[%s28_s0] ss:$0 sm:$0xff] }
   0x2   :  { %5 = vst [vmem:[%s29_s1] sm:$0xff] %v4_v0  ;;  %8 = vst [vmem:[%s29_s1 + $0x8] sm:$0xff] %v4_v0 }

// kernel: tile.26
= control target key start
LH: loop header
LB: loop body
LE: loop exit
PB: predicated region body
PF: predicated region fallthrough
CT: control target
= control target key end

     0   :  { %s131_s10 = smov 45   ;;  %s132_s11 = smov 39   ;;  %vm3_vm0 = vcmask 23552   ;;  %vm9_vm1 = vcmask 392552   ;;  %vm15_vm2 = vcmask 367952   ;;  %vm21_vm3 = vcmask 343352   ;;  %s207_s0 = inlined_call_operand.vmem [shape: f32[16,3], index: 0, kind: input, shape index: {}]   ;;  %s208_s1 = inlined_call_operand.vmem [shape: f32[1,48], index: 1, kind: output, shape index: {}]  }
   0x1   :  { %v101_v0 = vld [vmem:[%s207_s0 + $0xf] sm:$0x1]   ;;  %v103_v1 = vld [vmem:[%s207_s0 + $0xd] sm:$0x1]   ;;  %v102_v2 = vld [vmem:[%s207_s0 + $0xe] sm:$0x1]  }
   0x2   :  { %7 = vrot.lane.b32.xlu0 %v101_v0, %s131_s10  ;;  %19 = vrot.lane.b32.xlu1 %v103_v1, %s132_s11  ;;  %v104_v3 = vld [vmem:[%s207_s0 + $0xc] sm:$0x1]   ;;  %s133_s16 = smov 42   ;;  %s134_s17 = smov 36   ;;  %v105_v4 = vld [vmem:[%s207_s0 + $0xb] sm:$0x1]  }
   0x3   :  { %v106_v5 = vld [vmem:[%s207_s0 + $0xa] sm:$0x1]   ;;  %v2_v6 = vld [vmem:[%s207_s0] sm:$0x1]   ;;  %s135_s24 = smov 33   ;;  %s136_s25 = smov 30  }
   0x4   :  { %4 = vst.msk [vmem:[#allocation0] sm:$0x1] %vm3_vm0, %v2_v6   ;;  %v107_v7 = vld [vmem:[%s207_s0 + $0x9] sm:$0x1]   ;;  %v108_v8 = vld [vmem:[%s207_s0 + $0x8] sm:$0x1]  }
   0x5   :  { %s137_s30 = smov 27   ;;  %s138_s2 = smov 24   ;;  %v109_v9 = vld [vmem:[%s207_s0 + $0x7] sm:$0x1]   ;;  %v110_v10 = vld [vmem:[%s207_s0 + $0x6] sm:$0x1]  }
   0x6   :  { %13 = vrot.lane.b32.xlu0 %v102_v2, %s133_s16  ;;  %25 = vrot.lane.b32.xlu1 %v104_v3, %s134_s17  ;;  %s139_s7 = smov 21   ;;  %s140_s8 = smov 18   ;;  %v111_v11 = vld [vmem:[%s207_s0 + $0x5] sm:$0x1]   ;;  %v112_v12 = vld [vmem:[%s207_s0 + $0x4] sm:$0x1]  }
   0x7   :  { %s141_s13 = smov 15   ;;  %s142_s14 = smov 12   ;;  %v113_v13 = vld [vmem:[%s207_s0 + $0x3] sm:$0x1]   ;;  %v114_v14 = vld [vmem:[%s207_s0 + $0x2] sm:$0x1]  }
   0x8   :  { %s143_s19 = smov 9   ;;  %s144_s20 = smov 6   ;;  %v115_v15 = vld [vmem:[%s207_s0 + $0x1] sm:$0x1]   ;;  %vm27_vm4 = vcmask 318752   ;;  %vm33_vm5 = vcmask 294152  }
   0x9   :  { %s145_s0 = smov 3   ;;  %vm39_vm6 = vcmask 269552   ;;  %vm45_vm7 = vcmask 244952   ;;  %vm51_vm8 = vcmask 220352   ;;  %vm57_vm9 = vcmask 195752  }
   0xa   :  { %31 = vrot.lane.b32.xlu0 %v105_v4, %s135_s24  ;;  %37 = vrot.lane.b32.xlu1 %v106_v5, %s136_s25  ;;  %vm63_vm10 = vcmask 171152   ;;  %vm69_vm11 = vcmask 146552   ;;  %vm75_vm12 = vcmask 121952   ;;  %vm81_vm13 = vcmask 97352  }
   0xb   :  { %vm87_vm14 = vcmask 72752   ;;  %vm93_vm15 = vcmask 48152  }
   0xe   :  { %43 = vrot.lane.b32.xlu0 %v107_v7, %s137_s30  ;;  %49 = vrot.lane.b32.xlu1 %v108_v8, %s138_s2 }
  0x12   :  { %55 = vrot.lane.b32.xlu0 %v109_v9, %s139_s7  ;;  %61 = vrot.lane.b32.xlu1 %v110_v10, %s140_s8 }
  0x16   :  { %67 = vrot.lane.b32.xlu0 %v111_v11, %s141_s13  ;;  %73 = vrot.lane.b32.xlu1 %v112_v12, %s142_s14 }
  0x1a   :  { %79 = vrot.lane.b32.xlu0 %v113_v13, %s143_s19  ;;  %85 = vrot.lane.b32.xlu1 %v114_v14, %s144_s20 }
  0x1e   :  { %91 = vrot.lane.b32.xlu0 %v115_v15, %s145_s0 }
  0x74   :  { %v8_v16 = vpop.permute.xlu0 %7   ;;  %v20_v17 = vpop.permute.xlu1 %19  }
  0x75   :  { %10 = vst.msk [vmem:[#allocation0] sm:$0x1] %vm9_vm1, %v8_v16  }
  0x78   :  { %v14_v18 = vpop.permute.xlu0 %13   ;;  %v26_v19 = vpop.permute.xlu1 %25  }
  0x79   :  { %16 = vst.msk [vmem:[#allocation0] sm:$0x1] %vm15_vm2, %v14_v18  }
  0x7a   :  { %22 = vst.msk [vmem:[#allocation0] sm:$0x1] %vm21_vm3, %v20_v17  }
  0x7b   :  { %28 = vst.msk [vmem:[#allocation0] sm:$0x1] %vm27_vm4, %v26_v19  }
  0x7c   :  { %v32_v20 = vpop.permute.xlu0 %31   ;;  %v38_v21 = vpop.permute.xlu1 %37  }
  0x7d   :  { %34 = vst.msk [vmem:[#allocation0] sm:$0x1] %vm33_vm5, %v32_v20  }
  0x7e   :  { %40 = vst.msk [vmem:[#allocation0] sm:$0x1] %vm39_vm6, %v38_v21  }
  0x80   :  { %v44_v22 = vpop.permute.xlu0 %43   ;;  %v50_v23 = vpop.permute.xlu1 %49  }
  0x81   :  { %46 = vst.msk [vmem:[#allocation0] sm:$0x1] %vm45_vm7, %v44_v22  }
  0x82   :  { %52 = vst.msk [vmem:[#allocation0] sm:$0x1] %vm51_vm8, %v50_v23  }
  0x84   :  { %v56_v24 = vpop.permute.xlu0 %55   ;;  %v62_v25 = vpop.permute.xlu1 %61  }
  0x85   :  { %58 = vst.msk [vmem:[#allocation0] sm:$0x1] %vm57_vm9, %v56_v24  }
  0x86   :  { %64 = vst.msk [vmem:[#allocation0] sm:$0x1] %vm63_vm10, %v62_v25  }
  0x88   :  { %v68_v26 = vpop.permute.xlu0 %67   ;;  %v74_v27 = vpop.permute.xlu1 %73  }
  0x89   :  { %70 = vst.msk [vmem:[#allocation0] sm:$0x1] %vm69_vm11, %v68_v26  }
  0x8a   :  { %76 = vst.msk [vmem:[#allocation0] sm:$0x1] %vm75_vm12, %v74_v27  }
  0x8c   :  { %v80_v28 = vpop.permute.xlu0 %79   ;;  %v86_v29 = vpop.permute.xlu1 %85  }
  0x8d   :  { %82 = vst.msk [vmem:[#allocation0] sm:$0x1] %vm81_vm13, %v80_v28  }
  0x8e   :  { %88 = vst.msk [vmem:[#allocation0] sm:$0x1] %vm87_vm14, %v86_v29  }
  0x90   :  { %v92_v30 = vpop.permute.xlu0 %91  }
  0x91   :  { %94 = vst.msk [vmem:[#allocation0] sm:$0x1] %vm93_vm15, %v92_v30  }
  0x98   :  { %v98_v31 = vld [vmem:[#allocation0] sm:$0x1] }
  0x99   :  { %100 = vst [vmem:[%s208_s1] sm:$0x1] %v98_v31 }

// kernel: tile.21
= control target key start
LH: loop header
LB: loop body
LE: loop exit
PB: predicated region body
PF: predicated region fallthrough
CT: control target
= control target key end

     0   :  { %s22_s0 = inlined_call_operand.vmem [shape: f32[32], index: 0, kind: input, shape index: {}]   ;;  %s23_s1 = inlined_call_operand.vmem [shape: f32[8,32], index: 1, kind: output, shape index: {}]  }
   0x1   :  { %v4_v0 = vld [vmem:[%s22_s0] ss:$0 sm:$0xff] }
   0x2   :  { %5 = vst [vmem:[%s23_s1] sm:$0xff] %v4_v0 }

// kernel: tile.22
= control target key start
LH: loop header
LB: loop body
LE: loop exit
PB: predicated region body
PF: predicated region fallthrough
CT: control target
= control target key end

     0   :  { %s7_s6 = smov 3  ;;  %s14_s9 = smov 3  ;;  %vm4_vm0 = vcmask 261120   ;;  %vm11_vm1 = vcmask 1048320   ;;  %vm18_vm2 = vcmask 785920   ;;  %vm25_vm3 = vcmask 523520   ;;  %s76_s0 = inlined_call_operand.vmem [shape: f32[8,32], index: 0, kind: input, shape index: {}]   ;;  %s77_s1 = inlined_call_operand.vmem [shape: f32[1,256], index: 1, kind: output, shape index: {}]  }
   0x1   :  { %v38_v0 = vld [vmem:[%s76_s0 + $0x3] ss:$4 sm:%s7_s6]   ;;  %s45_s10 = smov 96   ;;  %s21_s11 = smov 3  ;;  %v39_v1 = vld [vmem:[%s76_s0 + $0x2] ss:$4 sm:%s14_s9]  }
   0x2   :  { %9 = vrot.lane.b32.xlu0 %v38_v0, %s45_s10  ;;  %v40_v2 = vld [vmem:[%s76_s0 + $0x1] ss:$4 sm:%s21_s11]   ;;  %s2_s16 = smov 3  ;;  %s46_s17 = smov 32  }
   0x3   :  { %23 = vrot.lane.b32.xlu1 %v40_v2, %s46_s17  ;;  %v3_v3 = vld [vmem:[%s76_s0] ss:$4 sm:%s2_s16]   ;;  %s47_s0 = smov 64  }
   0x4   :  { %5 = vst.msk [vmem:[#allocation0] ss:$8 sm:$0x3] %vm4_vm0, %v3_v3  }
   0x6   :  { %16 = vrot.lane.b32.xlu0 %v39_v1, %s47_s0 }
  0x74   :  { %v10_v4 = vpop.permute.xlu0 %9  }
  0x75   :  { %12 = vst.msk [vmem:[#allocation0] ss:$8 sm:$0x3] %vm11_vm1, %v10_v4   ;;  %v24_v5 = vpop.permute.xlu1 %23  }
  0x78   :  { %v17_v6 = vpop.permute.xlu0 %16  }
  0x79   :  { %19 = vst.msk [vmem:[#allocation0] ss:$8 sm:$0x3] %vm18_vm2, %v17_v6  }
  0x7a   :  { %26 = vst.msk [vmem:[#allocation0] ss:$8 sm:$0x3] %vm25_vm3, %v24_v5  }
  0x81   :  { %v30_v7 = vld [vmem:[#allocation0] sm:$0x1]  ;;  %v34_v8 = vld [vmem:[#allocation0 + $0x8] sm:$0x1] }
  0x82   :  { %32 = vst [vmem:[%s77_s1] sm:$0x1] %v30_v7  ;;  %41 = vst [vmem:[%s77_s1 + $0x1] sm:$0x1] %v34_v8 }

// kernel: tile.34
= control target key start
LH: loop header
LB: loop body
LE: loop exit
PB: predicated region body
PF: predicated region fallthrough
CT: control target
= control target key end

     0   :  { %s22_s0 = inlined_call_operand.vmem [shape: f32[32], index: 0, kind: input, shape index: {}]   ;;  %s23_s1 = inlined_call_operand.vmem [shape: f32[4,32], index: 1, kind: output, shape index: {}]  }
   0x1   :  { %v4_v0 = vld [vmem:[%s22_s0] ss:$0 sm:$0xff] }
   0x2   :  { %5 = vst [vmem:[%s23_s1] sm:$0xf] %v4_v0 }

// kernel: tile.35
= control target key start
LH: loop header
LB: loop body
LE: loop exit
PB: predicated region body
PF: predicated region fallthrough
CT: control target
= control target key end

     0   :  { %vm7_vm0 = vcmask 261120   ;;  %s37_s8 = smov 32   ;;  %s38_s9 = smov 64   ;;  %vm13_vm1 = vcmask 1048320   ;;  %vm19_vm2 = vcmask 785920   ;;  %vm25_vm3 = vcmask 523520   ;;  %s55_s0 = inlined_call_operand.vmem [shape: f32[4,32], index: 0, kind: input, shape index: {}]   ;;  %s56_s1 = inlined_call_operand.vmem [shape: f32[1,128], index: 1, kind: output, shape index: {}]  }
   0x1   :  { %v4_v0 = vld [vmem:[%s55_s0] sm:$0xf]  ;;  %s36_s0 = smov 96  }
   0x2   :  { %5 = vst [vmem:[#allocation1] sm:$0xf] %v4_v0 }
   0x9   :  { %v10_v1 = vld [vmem:[#allocation1 + $0x3] sm:$0x1]   ;;  %v22_v2 = vld [vmem:[#allocation1 + $0x1] sm:$0x1]   ;;  %v6_v3 = vld [vmem:[#allocation1] sm:$0x1]  }
   0xa   :  { %11 = vrot.lane.b32.xlu0 %v10_v1, %s36_s0  ;;  %23 = vrot.lane.b32.xlu1 %v22_v2, %s37_s8  ;;  %v16_v4 = vld [vmem:[#allocation1 + $0x2] sm:$0x1]   ;;  %8 = vst.msk [vmem:[#allocation0] sm:$0x1] %vm7_vm0, %v6_v3  }
   0xe   :  { %17 = vrot.lane.b32.xlu0 %v16_v4, %s38_s9 }
  0x7c   :  { %v12_v5 = vpop.permute.xlu0 %11   ;;  %v24_v6 = vpop.permute.xlu1 %23  }
  0x7d   :  { %14 = vst.msk [vmem:[#allocation0] sm:$0x1] %vm13_vm1, %v12_v5  }
  0x80   :  { %v18_v7 = vpop.permute.xlu0 %17  }
  0x81   :  { %20 = vst.msk [vmem:[#allocation0] sm:$0x1] %vm19_vm2, %v18_v7  }
  0x82   :  { %26 = vst.msk [vmem:[#allocation0] sm:$0x1] %vm25_vm3, %v24_v6  }
  0x89   :  { %v30_v8 = vld [vmem:[#allocation0] sm:$0x1] }
  0x8a   :  { %32 = vst [vmem:[%s56_s1] sm:$0x1] %v30_v8 }

// kernel: trt_hrnet_forward.4
= control target key start
LH: loop header
LB: loop body
LE: loop exit
PB: predicated region body
PF: predicated region fallthrough
CT: control target
= control target key end

     0   :  { %s976_s12 = smov 0   ;;  %s1312_s0 = inlined_call_operand.vmem [shape: f32[2,4,2,256], index: 0, kind: input, shape index: {}]   ;;  %s1313_s1 = inlined_call_operand.vmem [shape: f32[3,256,128], index: 1, kind: input, shape index: {}]   ;;  %s1314_s2 = inlined_call_operand.vmem [shape: f32[1,128], index: 2, kind: input, shape index: {}]   ;;  %s1315_s3 = inlined_call_operand.vmem [shape: f32[2,4,128], index: 3, kind: output, shape index: {}]  }
   0x1 LB: > { %s652_s13 = sadd.s32 4294967295, %s953_s12   ;;  %p656_p0 = scmp.ge.s32.totalorder %s953_s12, 1  ;;  %s953_s12 = sphi %s976_s12, %s13_s12  }
   0x2   : > { %p137_p1 = scmp.lt.s32.totalorder %s953_s12, 3 }
   0x4   : > { %p138_p2 = pnand %p656_p0, %p137_p1 }
   0x5   : > { %v683_v0 = vld [vmem:[%s1313_s1 + $0x180] sm:$0xff] (!%p138_p2)  ;;  %v684_v1 = vld [vmem:[%s1313_s1 + $0x188] sm:$0xff] (!%p138_p2)  ;;  %v685_v11 = vld [vmem:[%s1313_s1 + $0x190] sm:$0xff] (!%p138_p2)  ;;  %p1076_p3 = scmp.lt.s32.totalorder (!%p138_p2), %s652_s13, 1  ;;  %v955_v62 = vmov (!%p138_p2), 1966171168  }
   0x6   : > { %141 = sbr.rel (%p138_p2) target bundleno = 295 (0x127), region = 32  ;;  %v258_v2 = vld [vmem:[%s1313_s1 + $0x80] sm:$0xff] (!%p138_p2)  ;;  %v842_v3 = vpack.c.bf16 (!%p138_p2), %v684_v1, %v683_v0  ;;  %v259_v4 = vld [vmem:[%s1313_s1 + $0x88] sm:$0xff] (!%p138_p2)  ;;  %v686_v13 = vld [vmem:[%s1313_s1 + $0x198] sm:$0xff] (!%p138_p2)  ;;  %v191_v63 = vunpack.c.l.s4 (!%p138_p2), %v955_v62  ;;  %v193_v0 = vlaneseq (!%p138_p2)  ;;  %vm222_vm0 = vcmask (!%p138_p2), 1047556  }
   0x7   : > { %v667_v5 = vld [vmem:[%s1313_s1 + $0x100] sm:$0xff] (!%p138_p2)  ;;  %v668_v6 = vld [vmem:[%s1313_s1 + $0x108] sm:$0xff] (!%p138_p2)  ;;  %v874_v7 = vpack.c.bf16 (!%p138_p2), %v259_v4, %v258_v2  ;;  %v260_v14 = vld [vmem:[%s1313_s1 + $0x90] sm:$0xff] (!%p138_p2)  ;;  %v846_v16 = vpack.c.bf16 (!%p138_p2), %v686_v13, %v685_v11 }
   0x8   : > { %v844_v8 = vpack.c.bf16 (!%p138_p2), %v668_v6, %v667_v5  ;;  %v242_v9 = vld [vmem:[%s1313_s1] sm:$0xff] (!%p138_p2)  ;;  %v243_v10 = vld [vmem:[%s1313_s1 + $0x8] sm:$0xff] (!%p138_p2)  ;;  %843 = vmatprep.subr.bf16.mxu0 (!%p138_p2), %v842_v3  ;;  %v261_v15 = vld [vmem:[%s1313_s1 + $0x98] sm:$0xff] (!%p138_p2) }
   0x9   : > { %v876_v12 = vpack.c.bf16 (!%p138_p2), %v243_v10, %v242_v9  ;;  %875 = vmatprep.subr.bf16.mxu1 (!%p138_p2), %v874_v7  ;;  %v878_v17 = vpack.c.bf16 (!%p138_p2), %v261_v15, %v260_v14  ;;  %v669_v18 = vld [vmem:[%s1313_s1 + $0x110] sm:$0xff] (!%p138_p2)  ;;  %v670_v19 = vld [vmem:[%s1313_s1 + $0x118] sm:$0xff] (!%p138_p2)  ;;  %v687_v23 = vld [vmem:[%s1313_s1 + $0x1a0] sm:$0xff] (!%p138_p2) }
   0xa   : > { %845 = vmatpush3.bf16.msra.mxu0 (!%p138_p2), %v844_v8  ;;  %v244_v20 = vld [vmem:[%s1313_s1 + $0x10] sm:$0xff] (!%p138_p2)  ;;  %v848_v21 = vpack.c.bf16 (!%p138_p2), %v670_v19, %v669_v18  ;;  %v245_v22 = vld [vmem:[%s1313_s1 + $0x18] sm:$0xff] (!%p138_p2)  ;;  %v688_v24 = vld [vmem:[%s1313_s1 + $0x1a8] sm:$0xff] (!%p138_p2) }
   0xb   : > { %877 = vmatpush3.bf16.msra.mxu1 (!%p138_p2), %v876_v12  ;;  %847 = vmatprep.subr.bf16.mxu0 (!%p138_p2), %v846_v16  ;;  %v880_v25 = vpack.c.bf16 (!%p138_p2), %v245_v22, %v244_v20  ;;  %v850_v26 = vpack.c.bf16 (!%p138_p2), %v688_v24, %v687_v23  ;;  %v262_v27 = vld [vmem:[%s1313_s1 + $0xa0] sm:$0xff] (!%p138_p2)  ;;  %v263_v28 = vld [vmem:[%s1313_s1 + $0xa8] sm:$0xff] (!%p138_p2)  ;;  %v689_v35 = vld [vmem:[%s1313_s1 + $0x1b0] sm:$0xff] (!%p138_p2)  ;;  %v192_v16 = vunpack.c.0.s8 (!%p138_p2), %v191_v63 }
   0xc   : > { %879 = vmatprep.subr.bf16.mxu1 (!%p138_p2), %v878_v17  ;;  %v671_v29 = vld [vmem:[%s1313_s1 + $0x120] sm:$0xff] (!%p138_p2)  ;;  %v882_v30 = vpack.c.bf16 (!%p138_p2), %v263_v28, %v262_v27  ;;  %v672_v31 = vld [vmem:[%s1313_s1 + $0x128] sm:$0xff] (!%p138_p2)  ;;  %v690_v36 = vld [vmem:[%s1313_s1 + $0x1b8] sm:$0xff] (!%p138_p2)  ;;  %v1162_v17 = vshrl.u32 (!%p138_p2), %v193_v0, 7 }
   0xd   : > { %v246_v32 = vld [vmem:[%s1313_s1 + $0x20] sm:$0xff]  ;;  %v247_v33 = vld [vmem:[%s1313_s1 + $0x28] sm:$0xff]  ;;  %v852_v34 = vpack.c.bf16 %v672_v31, %v671_v29  ;;  %v264_v37 = vld [vmem:[%s1313_s1 + $0xb0] sm:$0xff]  ;;  %v854_v39 = vpack.c.bf16 %v690_v36, %v689_v35  ;;  %s1318_s13 = smov (!%p1076_p3, %s652_s13), 1 }
   0xe   : > { %849 = vmatpush3.bf16.msra.mxu0 %v848_v21  ;;  %v884_v38 = vpack.c.bf16 %v247_v33, %v246_v32  ;;  %v265_v40 = vld [vmem:[%s1313_s1 + $0xb8] sm:$0xff]  ;;  %v673_v41 = vld [vmem:[%s1313_s1 + $0x130] sm:$0xff]  ;;  %v691_v46 = vld [vmem:[%s1313_s1 + $0x1c0] sm:$0xff]  ;;  %s736_s11 = sshll.u32 %s1318_s13, 4  ;;  %v195_v32 = vsub.s32 %v192_v16, %v1162_v17  ;;  %vm233_vm1 = vcmp.ge.s32.totalorder %v1162_v17, 1  ;;  %s659_s14 = sshll.u32 %s1318_s13, 2 }
   0xf   : > { %881 = vmatpush3.bf16.msra.mxu1 %v880_v25  ;;  %851 = vmatprep.subr.bf16.mxu0 %v850_v26  ;;  %v674_v42 = vld [vmem:[%s1313_s1 + $0x138] sm:$0xff]  ;;  %v886_v43 = vpack.c.bf16 %v265_v40, %v264_v37  ;;  %v248_v44 = vld [vmem:[%s1313_s1 + $0x30] sm:$0xff]  ;;  %v692_v47 = vld [vmem:[%s1313_s1 + $0x1c8] sm:$0xff]  ;;  %s164_s7 = scalar_lea.vmem %s1312_s0, %s736_s11  ;;  %s168_s11 = scalar_lea.vmem %s1315_s3, %s659_s14 }
  0x10   : > { %883 = vmatprep.subr.bf16.mxu1 %v882_v30  ;;  %v249_v45 = vld [vmem:[%s1313_s1 + $0x38] sm:$0xff]  ;;  %v266_v48 = vld [vmem:[%s1313_s1 + $0xc0] sm:$0xff]  ;;  %v267_v49 = vld [vmem:[%s1313_s1 + $0xc8] sm:$0xff]  ;;  %v856_v50 = vpack.c.bf16 %v674_v42, %v673_v41  ;;  %v858_v52 = vpack.c.bf16 %v692_v47, %v691_v46 }
  0x11   : > { %v888_v51 = vpack.c.bf16 %v249_v45, %v248_v44  ;;  %v675_v53 = vld [vmem:[%s1313_s1 + $0x140] sm:$0xff]  ;;  %v676_v54 = vld [vmem:[%s1313_s1 + $0x148] sm:$0xff]  ;;  %v890_v56 = vpack.c.bf16 %v267_v49, %v266_v48  ;;  %v693_v58 = vld [vmem:[%s1313_s1 + $0x1d0] sm:$0xff] }
  0x12   : > { %853 = vmatpush3.bf16.msra.mxu0 %v852_v34  ;;  %v250_v55 = vld [vmem:[%s1313_s1 + $0x40] sm:$0xff]  ;;  %v251_v57 = vld [vmem:[%s1313_s1 + $0x48] sm:$0xff]  ;;  %v694_v59 = vld [vmem:[%s1313_s1 + $0x1d8] sm:$0xff]  ;;  %v860_v1 = vpack.c.bf16 %v676_v54, %v675_v53 }
  0x13   : > { %885 = vmatpush3.bf16.msra.mxu1 %v884_v38  ;;  %855 = vmatprep.subr.bf16.mxu0 %v854_v39  ;;  %v268_v60 = vld [vmem:[%s1313_s1 + $0xd0] sm:$0xff]  ;;  %v269_v61 = vld [vmem:[%s1313_s1 + $0xd8] sm:$0xff]  ;;  %v892_v4 = vpack.c.bf16 %v251_v57, %v250_v55  ;;  %v862_v5 = vpack.c.bf16 %v694_v59, %v693_v58  ;;  %v695_v8 = vld [vmem:[%s1313_s1 + $0x1e0] sm:$0xff] }
  0x14   : > { %887 = vmatprep.subr.bf16.mxu1 %v886_v43  ;;  %v677_v2 = vld [vmem:[%s1313_s1 + $0x150] sm:$0xff]  ;;  %v678_v3 = vld [vmem:[%s1313_s1 + $0x158] sm:$0xff]  ;;  %v894_v9 = vpack.c.bf16 %v269_v61, %v268_v60  ;;  %v696_v10 = vld [vmem:[%s1313_s1 + $0x1e8] sm:$0xff] }
  0x15   : > { %v252_v6 = vld [vmem:[%s1313_s1 + $0x50] sm:$0xff]  ;;  %v253_v7 = vld [vmem:[%s1313_s1 + $0x58] sm:$0xff]  ;;  %v270_v11 = vld [vmem:[%s1313_s1 + $0xe0] sm:$0xff]  ;;  %v864_v18 = vpack.c.bf16 %v678_v3, %v677_v2  ;;  %v866_v23 = vpack.c.bf16 %v696_v10, %v695_v8 }
  0x16   : > { %857 = vmatpush3.bf16.msra.mxu0 %v856_v50  ;;  %v271_v12 = vld [vmem:[%s1313_s1 + $0xe8] sm:$0xff]  ;;  %v679_v13 = vld [vmem:[%s1313_s1 + $0x160] sm:$0xff]  ;;  %v697_v20 = vld [vmem:[%s1313_s1 + $0x1f0] sm:$0xff]  ;;  %v896_v22 = vpack.c.bf16 %v253_v7, %v252_v6 }
  0x17   : > { %889 = vmatpush3.bf16.msra.mxu1 %v888_v51  ;;  %859 = vmatprep.subr.bf16.mxu0 %v858_v52  ;;  %v680_v14 = vld [vmem:[%s1313_s1 + $0x168] sm:$0xff]  ;;  %v254_v15 = vld [vmem:[%s1313_s1 + $0x60] sm:$0xff]  ;;  %v698_v21 = vld [vmem:[%s1313_s1 + $0x1f8] sm:$0xff]  ;;  %v898_v27 = vpack.c.bf16 %v271_v12, %v270_v11 }
  0x18   : > { %891 = vmatprep.subr.bf16.mxu1 %v890_v56  ;;  %v255_v19 = vld [vmem:[%s1313_s1 + $0x68] sm:$0xff]  ;;  %v272_v24 = vld [vmem:[%s1313_s1 + $0xf0] sm:$0xff]  ;;  %v273_v25 = vld [vmem:[%s1313_s1 + $0xf8] sm:$0xff]  ;;  %v868_v35 = vpack.c.bf16 %v680_v14, %v679_v13  ;;  %v870_v40 = vpack.c.bf16 %v698_v21, %v697_v20 }
  0x19   : > { %v169_v26 = vld [vmem:[%s164_s7] ss:$2 sm:$0x3]  ;;  %v660_v28 = vld [vmem:[%s164_s7 + $0x4] ss:$2 sm:$0x3]  ;;  %v900_v36 = vpack.c.bf16 %v255_v19, %v254_v15  ;;  %v902_v46 = vpack.c.bf16 %v273_v25, %v272_v24 }
  0x1a   : > { %861 = vmatpush3.bf16.msra.mxu0 %v860_v1  ;;  %v661_v29 = vld [vmem:[%s164_s7 + $0x8] ss:$2 sm:$0x3]  ;;  %v681_v30 = vld [vmem:[%s1313_s1 + $0x170] sm:$0xff]  ;;  %v311_v33 = vcombine.low %v169_v26, %v660_v28  ;;  %v682_v41 = vld [vmem:[%s1313_s1 + $0x178] sm:$0xff] }
  0x1b   : > { %893 = vmatpush3.bf16.msra.mxu1 %v892_v4  ;;  %863 = vmatprep.subr.bf16.mxu0 %v862_v5  ;;  %v662_v31 = vld [vmem:[%s164_s7 + $0xc] ss:$2 sm:$0x3]  ;;  %v663_v34 = vld [vmem:[%s164_s7 + $0x1] ss:$2 sm:$0x3]  ;;  %v872_v53 = vpack.c.bf16 %v682_v41, %v681_v30 }
  0x1c   : > { %895 = vmatprep.subr.bf16.mxu1 %v894_v9  ;;  %v312_v37 = vcombine.low %v661_v29, %v662_v31  ;;  %v664_v38 = vld [vmem:[%s164_s7 + $0x5] ss:$2 sm:$0x3]  ;;  %v665_v39 = vld [vmem:[%s164_s7 + $0x9] ss:$2 sm:$0x3]  ;;  %v319_v43 = vrot.slane %v311_v33, %v195_v32 }
  0x1d   : > { %v256_v42 = vld [vmem:[%s1313_s1 + $0x70] sm:$0xff]  ;;  %v666_v44 = vld [vmem:[%s164_s7 + $0xd] ss:$2 sm:$0x3]  ;;  %v188_v45 = vcombine.low %v663_v34, %v664_v38  ;;  %v257_v47 = vld [vmem:[%s1313_s1 + $0x78] sm:$0xff] }
  0x1e   : > { %865 = vmatpush3.bf16.msra.mxu0 %v864_v18  ;;  %v326_v48 = vrot.slane %v312_v37, %v195_v32  ;;  %v189_v49 = vcombine.low %v665_v39, %v666_v44  ;;  %v717_v50 = vld [vmem:[%s1313_s1 + $0x280] sm:$0xff]  ;;  %v718_v51 = vld [vmem:[%s1313_s1 + $0x288] sm:$0xff]  ;;  %v904_v57 = vpack.c.bf16 %v257_v47, %v256_v42  ;;  %v719_v0 = vld [vmem:[%s1313_s1 + $0x290] sm:$0xff] }
  0x1f   : > { %897 = vmatpush3.bf16.msra.mxu1 %v896_v22  ;;  %867 = vmatprep.subr.bf16.mxu0 %v866_v23  ;;  %v196_v52 = vrot.slane %v188_v45, %v195_v32  ;;  %v906_v58 = vpack.c.bf16 %v718_v51, %v717_v50  ;;  %v701_v59 = vld [vmem:[%s1313_s1 + $0x200] sm:$0xff]  ;;  %v702_v60 = vld [vmem:[%s1313_s1 + $0x208] sm:$0xff]  ;;  %v720_v1 = vld [vmem:[%s1313_s1 + $0x298] sm:$0xff] }
  0x20   : > { %899 = vmatprep.subr.bf16.mxu1 %v898_v27  ;;  %v328_v54 = vcombine.high %v319_v43, %v326_v48  ;;  %v203_v55 = vrot.slane %v189_v49, %v195_v32  ;;  %v327_v56 = vcombine.low %v319_v43, %v326_v48  ;;  %v908_v5 = vpack.c.bf16 %v702_v60, %v701_v59  ;;  %v703_v7 = vld [vmem:[%s1313_s1 + $0x210] sm:$0xff]  ;;  %v704_v8 = vld [vmem:[%s1313_s1 + $0x218] sm:$0xff]  ;;  %v721_v11 = vld [vmem:[%s1313_s1 + $0x2a0] sm:$0xff] }
  0x21   : > { %v910_v6 = vpack.c.bf16 %v720_v1, %v719_v0  ;;  %v722_v12 = vld [vmem:[%s1313_s1 + $0x2a8] sm:$0xff]  ;;  %v912_v15 = vpack.c.bf16 %v704_v8, %v703_v7  ;;  %v705_v20 = vld [vmem:[%s1313_s1 + $0x220] sm:$0xff]  ;;  %v723_v22 = vld [vmem:[%s1313_s1 + $0x2b0] sm:$0xff] }
  0x22   : > { %869 = vmatpush3.bf16.msra.mxu0 %v868_v35  ;;  %v342_v61 = vrot.slane %v328_v54, %v195_v32  ;;  %v204_v62 = vcombine.low %v196_v52, %v203_v55  ;;  %v205_v63 = vcombine.high %v196_v52, %v203_v55  ;;  %v335_v2 = vrot.slane %v327_v56, %v195_v32  ;;  %v706_v21 = vld [vmem:[%s1313_s1 + $0x228] sm:$0xff]  ;;  %v724_v23 = vld [vmem:[%s1313_s1 + $0x2b8] sm:$0xff]  ;;  %v707_v30 = vld [vmem:[%s1313_s1 + $0x230] sm:$0xff] }
  0x23   : > { %901 = vmatpush3.bf16.msra.mxu1 %v900_v36  ;;  %871 = vmatprep.subr.bf16.mxu0 %v870_v40  ;;  %v914_v19 = vpack.c.bf16 %v722_v12, %v721_v11  ;;  %v916_v28 = vpack.c.bf16 %v706_v21, %v705_v20  ;;  %v918_v29 = vpack.c.bf16 %v724_v23, %v723_v22  ;;  %v708_v31 = vld [vmem:[%s1313_s1 + $0x238] sm:$0xff]  ;;  %v725_v17 = vld [vmem:[%s1313_s1 + $0x2c0] sm:$0xff]  ;;  %v710_v36 = vld [vmem:[%s1313_s1 + $0x248] sm:$0xff] }
  0x24   : > { %903 = vmatprep.subr.bf16.mxu1 %v902_v46  ;;  %409 = vmatprep.mubr.f32.mxu0 %v342_v61  ;;  %v1213_v3 = vrot.slane %v204_v62, %v195_v32  ;;  %v219_v4 = vrot.slane %v205_v63, %v195_v32  ;;  %v726_v32 = vld [vmem:[%s1313_s1 + $0x2c8] sm:$0xff]  ;;  %v920_v33 = vpack.c.bf16 %v708_v31, %v707_v30  ;;  %v709_v35 = vld [vmem:[%s1313_s1 + $0x240] sm:$0xff]  ;;  %v727_v37 = vld [vmem:[%s1313_s1 + $0x2d0] sm:$0xff] }
  0x25   : > { %v922_v34 = vpack.c.bf16 %v726_v32, %v725_v17  ;;  %v728_v38 = vld [vmem:[%s1313_s1 + $0x2d8] sm:$0xff]  ;;  %v924_v39 = vpack.c.bf16 %v710_v36, %v709_v35  ;;  %v711_v41 = vld [vmem:[%s1313_s1 + $0x250] sm:$0xff]  ;;  %v729_v43 = vld [vmem:[%s1313_s1 + $0x2e0] sm:$0xff] }
  0x26   : > { %873 = vmatpush3.bf16.msra.mxu0 %v872_v53  ;;  %v223_v9 = vrot.slane %v1213_v3, 4  ;;  %v225_v10 = vrot.slane %v219_v4, 4  ;;  %v926_v40 = vpack.c.bf16 %v728_v38, %v727_v37  ;;  %v712_v42 = vld [vmem:[%s1313_s1 + $0x258] sm:$0xff]  ;;  %v730_v44 = vld [vmem:[%s1313_s1 + $0x2e8] sm:$0xff]  ;;  %v713_v47 = vld [vmem:[%s1313_s1 + $0x260] sm:$0xff] }
  0x27   : > { %905 = vmatpush3.bf16.msra.mxu1 %v904_v57  ;;  %907 = vmatprep.subr.bf16.mxu0 %v906_v58  ;;  %v928_v45 = vpack.c.bf16 %v712_v42, %v711_v41  ;;  %v930_v46 = vpack.c.bf16 %v730_v44, %v729_v43  ;;  %v714_v48 = vld [vmem:[%s1313_s1 + $0x268] sm:$0xff]  ;;  %v731_v49 = vld [vmem:[%s1313_s1 + $0x2f0] sm:$0xff]  ;;  %v732_v50 = vld [vmem:[%s1313_s1 + $0x2f8] sm:$0xff] }
  0x28   : > { %v224_v13 = vsel %vm222_vm0, %v223_v9, %v1213_v3  ;;  %v226_v14 = vsel %vm222_vm0, %v225_v10, %v219_v4  ;;  %v932_v51 = vpack.c.bf16 %v714_v48, %v713_v47  ;;  %v934_v52 = vpack.c.bf16 %v732_v50, %v731_v49  ;;  %v715_v53 = vld [vmem:[%s1313_s1 + $0x270] sm:$0xff]  ;;  %v716_v54 = vld [vmem:[%s1313_s1 + $0x278] sm:$0xff] }
  0x29   : > { %410 = vmatmul.mubr.f32.vlgmr.msra.gmra.mrb[0].mxu0 %v335_v2  ;;  %v227_v16 = vrot.slane %v224_v13, 4  ;;  %v228_v18 = vrot.slane %v226_v14, 4  ;;  %v936_v55 = vpack.c.bf16 %v716_v54, %v715_v53  ;;  %v733_v2 = vld [vmem:[%s1314_s2] ss:$0 sm:$0xff] }
  0x2a   : > { %909 = vmatpush3.bf16.msra.mxu0 %v908_v5  ;;  %582 = vmatprep.mubr.f32.mxu0 %v219_v4 }
  0x2b   : > { %911 = vmatprep.subr.bf16.mxu0 %v910_v6  ;;  %v230_v24 = vsel %vm222_vm0, %v228_v18, %v219_v4  ;;  %v229_v25 = vsel %vm222_vm0, %v227_v16, %v1213_v3 }
  0x2c   : > { %v237_v26 = vrot.slane %v230_v24, 3  ;;  %v236_v27 = vrot.slane %v229_v25, 3 }
  0x2e   : > { %913 = vmatpush3.bf16.msra.mxu0 %v912_v15  ;;  %699 = vmatprep.mubr.msk.f32.mxu1 %vm233_vm1, %v237_v26 }
  0x2f   : > { %915 = vmatprep.subr.bf16.mxu0 %v914_v19  ;;  %700 = vmatmul.mubr.msk.f32.vlgmr.msra.gmra.mrb[0].mxu1 %vm233_vm1, %v236_v27 }
  0x32   : > { %917 = vmatpush3.bf16.msra.mxu0 %v916_v28 }
  0x33   : > { %919 = vmatprep.subr.bf16.mxu0 %v918_v29 }
  0x36   : > { %921 = vmatpush3.bf16.msra.mxu0 %v920_v33 }
  0x37   : > { %923 = vmatprep.subr.bf16.mxu0 %v922_v34 }
  0x3a   : > { %925 = vmatpush3.bf16.msra.mxu0 %v924_v39 }
  0x3b   : > { %927 = vmatprep.subr.bf16.mxu0 %v926_v40 }
  0x3e   : > { %929 = vmatpush3.bf16.msra.mxu0 %v928_v45 }
  0x3f   : > { %931 = vmatprep.subr.bf16.mxu0 %v930_v46 }
  0x42   : > { %933 = vmatpush3.bf16.msra.mxu0 %v932_v51 }
  0x43   : > { %935 = vmatprep.subr.bf16.mxu0 %v934_v52 }
  0x46   : > { %937 = vmatpush3.bf16.msra.mxu0 %v936_v55 }
  0x49   : > { %583 = vmatmul.mubr.f32.vlgmr.msra.gmra.mrb[2].mxu0 %v1213_v3 }
  0xfc   : > { %v769_v56 = vpop.f32.mrb[0].mxu0 }
  0xfd   : > { %v770_v57 = vpop.f32.mrb[1].mxu0 }
  0xfe   : > { %v771_v58 = vadd.f32 %v770_v57, %v769_v56 }
 0x102   : > { %v804_v59 = vpop.f32.mrb[0].mxu1 }
 0x103   : > { %v805_v60 = vpop.f32.mrb[1].mxu1 }
 0x104   : > { %v806_v61 = vadd.f32 %v805_v60, %v804_v59 }
 0x106   : > { %v482_v62 = vadd.f32 %v806_v61, %v771_v58 }
 0x11c   : > { %v839_v63 = vpop.f32.mrb[2].mxu0 }
 0x11d   : > { %v840_v0 = vpop.f32.mrb[3].mxu0 }
 0x11e   : > { %v841_v1 = vadd.f32 %v840_v0, %v839_v63 }
 0x120   : > { %v588_v4 = vadd.f32 %v841_v1, %v482_v62 }
 0x122   : > { %v596_v5 = vadd.f32 %v733_v2, %v588_v4 }
 0x124   : > { %v597_v3 = vmax.f32 %v596_v5, 0.0 }
 0x126   : > { %598 = vst [vmem:[%s168_s11] sm:$0xf] %v597_v3 }
 0x127 PF: > { %s13_s12 = sadd.s32 1, %s953_s12  }
 0x128   : > { %p10_p4 = scmp.ge.s32.totalorder %s13_s12, 4  }
 0x12a   :  { %12 = sbr.rel (!%p10_p4) target bundleno = 1 (0x1), region = 71 }

// kernel: trt_hrnet_forward.3
= control target key start
LH: loop header
LB: loop body
LE: loop exit
PB: predicated region body
PF: predicated region fallthrough
CT: control target
= control target key end

     0   :  { %s808_s18 = smov 0   ;;  %s1042_s0 = inlined_call_operand.vmem [shape: f32[2,8,2,48], index: 0, kind: input, shape index: {}]   ;;  %s1043_s1 = inlined_call_operand.vmem [shape: f32[3,48,256], index: 1, kind: input, shape index: {}]   ;;  %s1044_s2 = inlined_call_operand.vmem [shape: f32[1,256], index: 2, kind: input, shape index: {}]   ;;  %s1045_s3 = inlined_call_operand.vmem [shape: f32[1,48], index: 3, kind: input, shape index: {}]   ;;  %s1046_s4 = inlined_call_operand.vmem [shape: f32[1,48], index: 4, kind: input, shape index: {}]   ;;  %s1047_s5 = inlined_call_operand.vmem [shape: f32[2,8,256], index: 5, kind: output, shape index: {}]  }
   0x1 LB: > { %s678_s19 = sadd.s32 4294967295, %s775_s18   ;;  %p682_p0 = scmp.ge.s32.totalorder %s775_s18, 1  ;;  %s775_s18 = sphi %s808_s18, %s15_s18  }
   0x2   : > { %p187_p1 = scmp.lt.s32.totalorder %s775_s18, 3 }
   0x4   : > { %p188_p2 = pnand %p682_p0, %p187_p1 }
   0x5   : > { %v323_v0 = vld [vmem:[%s1043_s1 + $0x8] sm:$0xff] (!%p188_p2)  ;;  %v325_v1 = vld [vmem:[%s1043_s1 + $0x18] sm:$0xff] (!%p188_p2)  ;;  %v322_v2 = vld [vmem:[%s1043_s1] sm:$0xff] (!%p188_p2)  ;;  %p825_p3 = scmp.lt.s32.totalorder (!%p188_p2), %s678_s19, 1  ;;  %v777_v7 = vmov (!%p188_p2), 0.0   ;;  %v318_v8 = vlaneseq (!%p188_p2)  ;;  %vm296_vm0 = vcmask (!%p188_p2), 1041409  }
   0x6   : > { %191 = sbr.rel (%p188_p2) target bundleno = 265 (0x109), region = 40  ;;  %v732_v3 = vpack.c.bf16 (!%p188_p2), %v325_v1, %v323_v0  ;;  %v324_v4 = vld [vmem:[%s1043_s1 + $0x10] sm:$0xff] (!%p188_p2)  ;;  %v327_v5 = vld [vmem:[%s1043_s1 + $0x28] sm:$0xff] (!%p188_p2)  ;;  %v329_v6 = vld [vmem:[%s1043_s1 + $0x38] sm:$0xff] (!%p188_p2)  ;;  %510 = vmatprep.mubr.f32.mxu0 (!%p188_p2), %v777_v7  ;;  %436 = vmatprep.mubr.f32.mxu1 (!%p188_p2), %v777_v7  ;;  %vm299_vm1 = vcmask (!%p188_p2), 1042434   ;;  %vm302_vm2 = vcmask (!%p188_p2), 1043459  }
   0x7   : > { %v734_v9 = vpack.c.bf16 (!%p188_p2), %v324_v4, %v322_v2  ;;  %v736_v10 = vpack.c.bf16 (!%p188_p2), %v329_v6, %v327_v5  ;;  %v326_v11 = vld [vmem:[%s1043_s1 + $0x20] sm:$0xff] (!%p188_p2)  ;;  %v328_v12 = vld [vmem:[%s1043_s1 + $0x30] sm:$0xff] (!%p188_p2)  ;;  %v331_v13 = vld [vmem:[%s1043_s1 + $0x48] sm:$0xff] (!%p188_p2)  ;;  %v888_v26 = vshrl.u32 (!%p188_p2), %v318_v8, 7  ;;  %vm305_vm3 = vcmask (!%p188_p2), 1044484  }
   0x8   : > { %733 = vmatprep.subr.bf16.mxu0 (!%p188_p2), %v732_v3  ;;  %v333_v14 = vld [vmem:[%s1043_s1 + $0x58] sm:$0xff] (!%p188_p2)  ;;  %v330_v15 = vld [vmem:[%s1043_s1 + $0x40] sm:$0xff] (!%p188_p2)  ;;  %v332_v16 = vld [vmem:[%s1043_s1 + $0x50] sm:$0xff] (!%p188_p2)  ;;  %v738_v17 = vpack.c.bf16 (!%p188_p2), %v328_v12, %v326_v11  ;;  %vm308_vm4 = vcmask (!%p188_p2), 1045509   ;;  %vm311_vm5 = vcmask (!%p188_p2), 1046534   ;;  %vm314_vm6 = vcmask (!%p188_p2), 1047559  }
   0x9   : > { %735 = vmatpush1.bf16.msra.mxu0 (!%p188_p2), %v734_v9  ;;  %v690_v18 = vld [vmem:[%s1043_s1 + $0x68] sm:$0xff] (!%p188_p2)  ;;  %v692_v19 = vld [vmem:[%s1043_s1 + $0x78] sm:$0xff] (!%p188_p2)  ;;  %v689_v20 = vld [vmem:[%s1043_s1 + $0x60] sm:$0xff] (!%p188_p2)  ;;  %v740_v21 = vpack.c.bf16 (!%p188_p2), %v333_v14, %v331_v13  ;;  %v742_v31 = vpack.c.bf16 (!%p188_p2), %v332_v16, %v330_v15  ;;  %vm369_vm7 = vcmask (!%p188_p2), 392192   ;;  %vm320_vm8 = vcmp.ge.s32.totalorder (!%p188_p2), %v888_v26, 1 }
   0xa   : > { %737 = vmatprep.subr.bf16.mxu0 (!%p188_p2), %v736_v10  ;;  %v720_v22 = vpack.c.bf16 (!%p188_p2), %v692_v19, %v690_v18  ;;  %v691_v23 = vld [vmem:[%s1043_s1 + $0x70] sm:$0xff] (!%p188_p2)  ;;  %v704_v24 = vld [vmem:[%s1043_s1 + $0xc8] sm:$0xff] (!%p188_p2)  ;;  %v706_v25 = vld [vmem:[%s1043_s1 + $0xd8] sm:$0xff] (!%p188_p2) }
   0xb   : > { %v722_v27 = vpack.c.bf16 (!%p188_p2), %v691_v23, %v689_v20  ;;  %v893_v28 = vld [vmem:[%s1045_s3] ss:$0 sm:$0xff] (!%p188_p2)  ;;  %v744_v32 = vpack.c.bf16 (!%p188_p2), %v706_v25, %v704_v24  ;;  %v694_v52 = vld [vmem:[%s1043_s1 + $0x88] sm:$0xff] (!%p188_p2)  ;;  %v696_v53 = vld [vmem:[%s1043_s1 + $0x98] sm:$0xff] (!%p188_p2) }
   0xc   : > { %v898_v29 = vld [vmem:[%s1046_s4] ss:$0 sm:$0xff] (!%p188_p2)  ;;  %721 = vmatprep.subr.bf16.mxu1 (!%p188_p2), %v720_v22  ;;  %v695_v58 = vld [vmem:[%s1043_s1 + $0x90] sm:$0xff] (!%p188_p2)  ;;  %v698_v1 = vld [vmem:[%s1043_s1 + $0xa8] sm:$0xff] (!%p188_p2)  ;;  %v724_v3 = vpack.c.bf16 (!%p188_p2), %v696_v53, %v694_v52 }
   0xd   : > { %s1050_s19 = smov (!%p825_p3, %s678_s19), 1  ;;  %739 = vmatpush1.bf16.msra.mxu0 %v738_v17  ;;  %723 = vmatpush1.bf16.msra.mxu1 %v722_v27  ;;  %v693_v57 = vld [vmem:[%s1043_s1 + $0x80] sm:$0xff]  ;;  %v944_v0 = vld [vmem:[%s1043_s1 + $0xd0] sm:$0xff]  ;;  %v700_v4 = vld [vmem:[%s1043_s1 + $0xb8] sm:$0xff] }
   0xe   : > { %s718_s28 = sshll.u32 %s1050_s19, 4  ;;  %741 = vmatprep.subr.bf16.mxu0 %v740_v21  ;;  %v939_v63 = vld [vmem:[%s1043_s1 + $0xc0] sm:$0xff]  ;;  %v699_v6 = vld [vmem:[%s1043_s1 + $0xb0] sm:$0xff]  ;;  %v726_v10 = vpack.c.bf16 %v695_v58, %v693_v57  ;;  %725 = vmatprep.subr.bf16.mxu1 %v724_v3  ;;  %v728_v14 = vpack.c.bf16 %v700_v4, %v698_v1  ;;  %v712_v58 = vld [vmem:[%s1043_s1 + $0x108] sm:$0xff] }
   0xf   : > { %s886_s12 = scalar_lea.vmem %s1042_s0, %s718_s28  ;;  %v697_v5 = vld [vmem:[%s1043_s1 + $0xa0] sm:$0xff]  ;;  %v746_v18 = vpack.c.bf16 %v944_v0, %v939_v63  ;;  %v709_v52 = vld [vmem:[%s1043_s1 + $0xf0] sm:$0xff]  ;;  %s224_s14 = scalar_lea.vmem %s1047_s5, %s718_s28 }
  0x10   : > { %v263_v30 = vld [vmem:[%s886_s12 + $0x1] sm:$0x1]  ;;  %v264_v33 = vld [vmem:[%s886_s12 + $0x3] sm:$0x1]  ;;  %v265_v34 = vld [vmem:[%s886_s12 + $0x5] sm:$0x1]  ;;  %v730_v19 = vpack.c.bf16 %v699_v6, %v697_v5 }
  0x11   : > { %v266_v35 = vld [vmem:[%s886_s12 + $0x7] sm:$0x1]  ;;  %v271_v36 = vadd.f32 %v893_v28, %v263_v30  ;;  %v267_v37 = vld [vmem:[%s886_s12 + $0x9] sm:$0x1]  ;;  %v268_v38 = vld [vmem:[%s886_s12 + $0xb] sm:$0x1]  ;;  %v272_v40 = vadd.f32 %v893_v28, %v264_v33  ;;  %v273_v41 = vadd.f32 %v893_v28, %v265_v34  ;;  %743 = vmatpush1.bf16.msra.mxu0 %v742_v31  ;;  %727 = vmatpush1.bf16.msra.mxu1 %v726_v10 }
  0x12   : > { %v269_v39 = vld [vmem:[%s886_s12 + $0xd] sm:$0x1]  ;;  %v274_v42 = vadd.f32 %v893_v28, %v266_v35  ;;  %v270_v43 = vld [vmem:[%s886_s12 + $0xf] sm:$0x1]  ;;  %v275_v44 = vadd.f32 %v893_v28, %v267_v37  ;;  %v276_v45 = vadd.f32 %v893_v28, %v268_v38  ;;  %745 = vmatprep.subr.bf16.mxu0 %v744_v32  ;;  %v225_v15 = vld [vmem:[%s886_s12] sm:$0x1]  ;;  %729 = vmatprep.subr.bf16.mxu1 %v728_v14 }
  0x13   : > { %v277_v46 = vadd.f32 %v893_v28, %v269_v39  ;;  %v279_v47 = vmul.f32 %v898_v29, %v271_v36  ;;  %v278_v48 = vadd.f32 %v893_v28, %v270_v43  ;;  %v280_v49 = vmul.f32 %v898_v29, %v272_v40  ;;  %v226_v16 = vld [vmem:[%s886_s12 + $0x2] sm:$0x1]  ;;  %v227_v20 = vld [vmem:[%s886_s12 + $0x4] sm:$0x1]  ;;  %v228_v21 = vld [vmem:[%s886_s12 + $0x6] sm:$0x1] }
  0x14   : > { %v281_v50 = vmul.f32 %v898_v29, %v273_v41  ;;  %v282_v51 = vmul.f32 %v898_v29, %v274_v42  ;;  %v283_v54 = vmul.f32 %v898_v29, %v275_v44  ;;  %v284_v55 = vmul.f32 %v898_v29, %v276_v45  ;;  %v229_v22 = vld [vmem:[%s886_s12 + $0x8] sm:$0x1]  ;;  %v230_v25 = vld [vmem:[%s886_s12 + $0xa] sm:$0x1]  ;;  %v231_v27 = vld [vmem:[%s886_s12 + $0xc] sm:$0x1] }
  0x15   : > { %v285_v56 = vmul.f32 %v898_v29, %v277_v46  ;;  %v286_v59 = vmul.f32 %v898_v29, %v278_v48  ;;  %v295_v60 = vrot.slane %v280_v49, 7  ;;  %v240_v23 = vadd.f32 %v893_v28, %v225_v15  ;;  %v232_v30 = vld [vmem:[%s886_s12 + $0xe] sm:$0x1]  ;;  %v710_v36 = vld [vmem:[%s1043_s1 + $0xf8] sm:$0xff]  ;;  %731 = vmatpush1.bf16.msra.mxu1 %v730_v19  ;;  %v713_v3 = vld [vmem:[%s1043_s1 + $0x110] sm:$0xff] }
  0x16   : > { %v298_v61 = vrot.slane %v281_v50, 6  ;;  %v301_v62 = vrot.slane %v282_v51, 5  ;;  %v304_v2 = vrot.slane %v283_v54, 4  ;;  %v307_v9 = vrot.slane %v284_v55, 3  ;;  %v708_v35 = vld [vmem:[%s1043_s1 + $0xe8] sm:$0xff] }
  0x17   : > { %v297_v8 = vsel %vm296_vm0, %v295_v60, %v279_v47  ;;  %v310_v12 = vrot.slane %v285_v56, 2  ;;  %v313_v13 = vrot.slane %v286_v59, 1  ;;  %v241_v31 = vadd.f32 %v893_v28, %v226_v16  ;;  %v714_v59 = vld [vmem:[%s1043_s1 + $0x118] sm:$0xff]  ;;  %v605_v14 = vld [vmem:[%s1044_s2] sm:$0x3] }
  0x18   : > { %v300_v11 = vsel %vm299_vm1, %v298_v61, %v297_v8  ;;  %v242_v32 = vadd.f32 %v893_v28, %v227_v20  ;;  %v243_v33 = vadd.f32 %v893_v28, %v228_v21  ;;  %v244_v37 = vadd.f32 %v893_v28, %v229_v22 }
  0x19   : > { %v303_v17 = vsel %vm302_vm2, %v301_v62, %v300_v11  ;;  %v245_v38 = vadd.f32 %v893_v28, %v230_v25  ;;  %v246_v39 = vadd.f32 %v893_v28, %v231_v27  ;;  %v247_v41 = vadd.f32 %v893_v28, %v232_v30  ;;  %v707_v28 = vld [vmem:[%s1043_s1 + $0xe0] sm:$0xff] }
  0x1a   : > { %v306_v24 = vsel %vm305_vm3, %v304_v2, %v303_v17  ;;  %v255_v42 = vmul.f32 %v898_v29, %v240_v23  ;;  %v256_v43 = vmul.f32 %v898_v29, %v241_v31  ;;  %v257_v45 = vmul.f32 %v898_v29, %v242_v32  ;;  %v711_v2 = vld [vmem:[%s1043_s1 + $0x100] sm:$0xff] }
  0x1b   : > { %v309_v34 = vsel %vm308_vm4, %v307_v9, %v306_v24  ;;  %v258_v46 = vmul.f32 %v898_v29, %v243_v33  ;;  %v259_v47 = vmul.f32 %v898_v29, %v244_v37  ;;  %v748_v49 = vpack.c.bf16 %v710_v36, %v708_v35 }
  0x1c   : > { %v312_v40 = vsel %vm311_vm5, %v310_v12, %v309_v34  ;;  %v260_v50 = vmul.f32 %v898_v29, %v245_v38  ;;  %v261_v51 = vmul.f32 %v898_v29, %v246_v39  ;;  %v262_v53 = vmul.f32 %v898_v29, %v247_v41 }
  0x1d   : > { %v315_v44 = vsel %vm314_vm6, %v313_v13, %v312_v40  ;;  %v355_v54 = vrot.slane %v256_v43, 7  ;;  %v357_v55 = vrot.slane %v257_v45, 6  ;;  %v359_v56 = vrot.slane %v258_v46, 5 }
  0x1e   : > { %v317_v48 = vrot.slane %v315_v44, 7  ;;  %v361_v60 = vrot.slane %v259_v47, 4  ;;  %v363_v29 = vrot.slane %v260_v50, 3  ;;  %v750_v62 = vpack.c.bf16 %v709_v52, %v707_v28 }
  0x1f   : > { %v356_v61 = vsel %vm296_vm0, %v355_v54, %v255_v42  ;;  %v365_v0 = vrot.slane %v261_v51, 2  ;;  %v752_v1 = vpack.c.bf16 %v714_v59, %v712_v58  ;;  %v367_v5 = vrot.slane %v262_v53, 1 }
  0x20   : > { %v321_v57 = vsel %vm320_vm8, %v317_v48, 0.0  ;;  %v358_v63 = vsel %vm299_vm1, %v357_v55, %v356_v61  ;;  %v754_v9 = vpack.c.bf16 %v713_v3, %v711_v2  ;;  %v609_v12 = vsub.s32 0, %v888_v26 }
  0x21   : > { %702 = vmatmul.mubr.msk.f32.vlgmr.msra.gmra.mrb[0].mxu0 %vm369_vm7, %v321_v57  ;;  %v360_v4 = vsel %vm302_vm2, %v359_v56, %v358_v63  ;;  %v613_v15 = vsub.s32 1, %v888_v26 }
  0x22   : > { %747 = vmatpush1.bf16.msra.mxu0 %v746_v18  ;;  %596 = vmatprep.mubr.f32.mxu0 %v777_v7  ;;  %v362_v6 = vsel %vm305_vm3, %v361_v60, %v360_v4  ;;  %v610_v16 = vrot.slane %v605_v14, %v609_v12 }
  0x23   : > { %749 = vmatprep.subr.bf16.mxu0 %v748_v49  ;;  %v364_v8 = vsel %vm308_vm4, %v363_v29, %v362_v6  ;;  %v614_v18 = vrot.slane %v605_v14, %v613_v15 }
  0x24   : > { %v366_v7 = vsel %vm311_vm5, %v365_v0, %v364_v8 }
  0x25   : > { %v368_v10 = vsel %vm314_vm6, %v367_v5, %v366_v7 }
  0x26   : > { %751 = vmatpush1.bf16.msra.mxu0 %v750_v62  ;;  %701 = vmatmul.mubr.msk.f32.vlgmr.msra.gmra.mrb[0].mxu1 %vm369_vm7, %v368_v10 }
  0x27   : > { %753 = vmatprep.subr.bf16.mxu0 %v752_v1 }
  0x2a   : > { %755 = vmatpush1.bf16.msra.mxu0 %v754_v9 }
  0x2d   : > { %715 = vmatmul.mubr.msk.f32.vlgmr.msra.gmra.mrb[0].mxu0 %vm369_vm7, %v315_v44 }
  0xf9   : > { %v438_v11 = vpop.f32.mrb[0].mxu1 }
  0xfa   : > { %v440_v13 = vpop.f32.mrb[1].mxu1 }
 0x100   : > { %v598_v17 = vpop.f32.mrb[0].mxu0 }
 0x101   : > { %v756_v19 = vadd.f32 %v598_v17, %v438_v11  ;;  %v600_v20 = vpop.f32.mrb[1].mxu0 }
 0x102   : > { %v757_v21 = vadd.f32 %v600_v20, %v440_v13 }
 0x103   : > { %v617_v22 = vadd.f32 %v756_v19, %v610_v16 }
 0x104   : > { %v618_v23 = vadd.f32 %v757_v21, %v614_v18 }
 0x105   : > { %v619_v24 = vmax.f32 %v617_v22, 0.0 }
 0x106   : > { %v620_v25 = vmax.f32 %v618_v23, 0.0 }
 0x107   : > { %621 = vst [vmem:[%s224_s14] sm:$0xff] %v619_v24 }
 0x108   : > { %622 = vst [vmem:[%s224_s14 + $0x8] sm:$0xff] %v620_v25 }
 0x109 PF: > { %s15_s18 = sadd.s32 1, %s775_s18  }
 0x10a   : > { %p12_p4 = scmp.ge.s32.totalorder %s15_s18, 4  }
 0x10c   :  { %14 = sbr.rel (!%p12_p4) target bundleno = 1 (0x1), region = 72 }

// kernel: trt_hrnet_forward.5
= control target key start
LH: loop header
LB: loop body
LE: loop exit
PB: predicated region body
PF: predicated region fallthrough
CT: control target
= control target key end

     0   :  { %10 = vsyncpa [#allocation3], 0  ;;  %s812_s0 = inlined_call_operand.vmem [shape: f32[2,16,32], index: 0, kind: input, shape index: {}]   ;;  %s813_s1 = inlined_call_operand.vmem [shape: f32[32,17], index: 1, kind: input, shape index: {}]   ;;  %s814_s2 = inlined_call_operand.vmem [shape: f32[1,17], index: 2, kind: input, shape index: {}]   ;;  %s815_s3 = inlined_call_operand.hbm [shape: f32[2,1,17], index: 3, kind: output, shape index: {0}]   ;;  %s816_s4 = inlined_call_operand.hbm [shape: f32[2,1,17], index: 4, kind: output, shape index: {1}]  }
   0x1   :  { %12 = vsyncpa [#allocation3 + $0x1], 0 }
   0x2   :  { %13 = vsyncpa [#allocation5], 0 }
   0x3   :  { %15 = vsyncpa [#allocation5 + $0x1], 0  ;;  %s653_s15 = smov 0   ;;  %s655_s16 = smov 0  }
   0x4   :  { %s657_s17 = smov 0   ;;  %s659_s18 = smov 0  }
   0x5 LB: > { %s674_s19 = sadd.s32 4294967295, %s624_s18   ;;  %s447_s20 = sadd.s32 4294967294, %s624_s18   ;;  %s624_s18 = sphi %s659_s18, %s822_s18   ;;  %s620_s17 = sphi %s657_s17, %s821_s17   ;;  %s616_s16 = sphi %s655_s16, %s820_s16   ;;  %s612_s15 = sphi %s653_s15, %s819_s15  }
   0x6   : > { %s678_s21 = sadd.s32 1, %s624_s18   ;;  %s96_s22 = sadd.s32 1, %s620_s17 }
   0x7   : > { %s93_s23 = ssub.s32 %s624_s18, %s678_s21  ;;  %p106_p0 = scmp.ne.s32.totalorder %s620_s17, %s616_s16 }
   0x8   : > { %p94_p1 = scmp.eq.s32.totalorder %s93_s23, 0  ;;  %p107_p2 = scmp.eq.s32.totalorder %s674_s19, 1 }
   0x9   : > { %p112_p3 = scmp.ne.s32.totalorder %s616_s16, %s612_s15  ;;  %p113_p4 = scmp.eq.s32.totalorder %s447_s20, 1 }
   0xa   : > { %s689_s24 = scalar_select %p94_p1, %s620_s17, %s96_s22  }
   0xb   : > { %p691_p5 = por %p107_p2, %p106_p0  ;;  %p695_p6 = por %p113_p4, %p112_p3 }
   0xc   : > { %p450_p7 = scmp.ge.s32.totalorder %s624_s18, 1  ;;  %p171_p8 = scmp.lt.s32.totalorder %s624_s18, 3 }
   0xe   : > { %p172_p9 = pnand %p450_p7, %p171_p8 }
   0xf   : > { %v207_v0 = vld [vmem:[%s813_s1] sm:$0xff] (!%p172_p9)  ;;  %v208_v1 = vld [vmem:[%s813_s1 + $0x8] sm:$0xff] (!%p172_p9)  ;;  %v209_v2 = vld [vmem:[%s813_s1 + $0x10] sm:$0xff] (!%p172_p9)  ;;  %p200_p10 = scmp.lt.s32.totalorder (!%p172_p9), %s674_s19, 1  ;;  %vm218_vm0 = vcmask (!%p172_p9), 261120   ;;  %vm300_vm1 = vcmask (!%p172_p9), 138240   ;;  %v310_v17 = vlaneseq (!%p172_p9) }
  0x10   : > { %175 = sbr.rel (%p172_p9) target bundleno = 304 (0x130), region = 32  ;;  %v478_v3 = vpack.c.bf16 (!%p172_p9), %v208_v1, %v207_v0  ;;  %v210_v4 = vld [vmem:[%s813_s1 + $0x18] sm:$0xff] (!%p172_p9)  ;;  %v453_v8 = vld [vmem:[%s814_s2] ss:$0 sm:$0xff] (!%p172_p9)  ;;  %s724_s22 = sand.u32 (!%p172_p9), 1, %s616_s16   ;;  %vm330_vm2 = vcmask (!%p172_p9), 131072  }
  0x11   : > { %v482_v5 = vpack.c.bf16 (!%p172_p9), %v210_v4, %v209_v2  ;;  %v311_v20 = vshrl.u32 (!%p172_p9), %v310_v17, 7  ;;  %s456_s23 = sshll.u32 (!%p172_p9), %s674_s19, 4  ;;  %s193_s27 = scalar_lea.vmem (!%p172_p9), [#allocation2], %s724_s22 }
  0x12   : > { %479 = vmatprep.subr.bf16.mxu0 (!%p172_p9), %v478_v3  ;;  %s351_s28 = sshll.u32 (!%p172_p9), %s193_s27, 4  ;;  %s733_s5 = scalar_lea.hbm (!%p172_p9), %s815_s3, %s456_s23  ;;  %s735_s28 = int_to_ptr.vmem [resolvable:$true] %s351_s28 }
  0x13   : > { %481 = vmatpush3.bf16.msra.mxu0 (!%p172_p9), %v478_v3  ;;  %v312_v23 = vadd.s32 (!%p172_p9), 8, %v311_v20  ;;  %s335_s6 = scalar_lea.sflag (!%p172_p9), [#allocation3], %s724_s22  ;;  %s530_s7 = scalar_lea.vmem (!%p172_p9), %s735_s28, 16 }
  0x14   : > { %483 = vmatprep.subr.bf16.mxu0 (!%p172_p9), %v482_v5  ;;  %p531_p11 = scmp.ne.s32.totalorder (!%p172_p9), %s735_s28, %s530_s7  ;;  %s626_s8 = smov (!%p172_p9), [#allocation2]  }
  0x16   : > { %p532_p12 = pnand (!%p172_p9), %p531_p11, %p691_p5 }
  0x17   : > { %s201_s9 = scalar_select %p200_p10, %s674_s19, 1  ;;  %485 = vmatpush3.bf16.msra.mxu0 %v482_v5 }
  0x18   : > { %p533_p13 = pneg %p532_p12 }
  0x19   : > { %s460_s10 = sshll.u32 %s201_s9, 4  ;;  %s534_s9 = sshll.u32 %s626_s8, 4  ;;  %s535_s9 = int_to_ptr.vmem [resolvable:$false] %s534_s9 }
  0x1a   : > { %s204_s13 = scalar_lea.vmem %s812_s0, %s460_s10  ;;  %s536_s10 = scalar_lea.vmem %s535_s9, 32 }
  0x1b   : > { %v205_v6 = vld [vmem:[%s204_s13] sm:$0xff]  ;;  %v206_v7 = vld [vmem:[%s204_s13 + $0x8] sm:$0xff]  ;;  %p537_p0 = scmp.lt.s32.totalorder %s735_s28, %s535_s9  ;;  %p538_p1 = scmp.lt.s32.totalorder %s536_s10, %s530_s7 }
  0x1c   : > { %475 = vmatprep.mubr.msk.f32.mxu0 %vm218_vm0, %v205_v6 }
  0x1d   : > { %476 = vmatmul.mubr.msk.f32.vlgmr.msra.gmra.mrb[0].mxu0 %vm218_vm0, %v206_v7  ;;  %p539_p2 = por %p538_p1, %p537_p0 }
  0x1f   : > { %p540_p3 = pnand %p539_p2, %p533_p13 }
  0xf0   : > { %v477_v9 = vpop.f32.mrb[0].mxu0 }
  0xf1   : > { %v297_v10 = vadd.f32 %v477_v9, %v453_v8  ;;  %v291_v11 = vpop.f32.mrb[1].mxu0 }
  0xf2   : > { %v292_v12 = vadd.f32 %v453_v8, %v291_v11 }
  0xf3   : > { %v302_v13 = vsel %vm300_vm1, %v297_v10, -inf }
  0xf4   : > { %v301_v14 = vsel %vm300_vm1, %v292_v12, -inf }
  0xf5   : > { %v303_v15 = vmax.f32 %v301_v14, %v302_v13 }
  0xf7   : > { %v304_v16 = vrot.slane %v303_v15, 4 }
  0xf9   : > { %v305_v18 = vmax.f32 %v303_v15, %v304_v16 }
  0xfb   : > { %v306_v19 = vrot.slane %v305_v18, 2 }
  0xfd   : > { %v307_v21 = vmax.f32 %v305_v18, %v306_v19 }
  0xff   : > { %v308_v22 = vrot.slane %v307_v21, 1 }
 0x101   : > { %v309_v24 = vmax.f32 %v307_v21, %v308_v22 }
 0x103   : > { %vm313_vm3 = vcmp.eq.f32.partialorder %v292_v12, %v309_v24  ;;  %vm314_vm4 = vcmp.eq.f32.partialorder %v297_v10, %v309_v24  ;;  %331 = vst.msk [vmem:[%s193_s27] sm:$0x1] %vm330_vm2, %v309_v24 }
 0x104   : > { %v315_v25 = vsel %vm313_vm3, %v311_v20, 16  ;;  %v316_v26 = vsel %vm314_vm4, %v312_v23, 16 }
 0x105   : > { %543 = shalt.err (!%p540_p3)
}
 0x106   : > { %s544_s11 = scalar_lea.hbm %s733_s5, 16  ;;  %s548_s14 = scalar_lea.hbm %s815_s3, 32 }
 0x107   : > { %p545_p4 = scmp.ne.s32.totalorder %s733_s5, %s544_s11  ;;  %p549_p9 = scmp.lt.u32.totalorder %s733_s5, %s815_s3 }
 0x108   : > { %p550_p10 = scmp.lt.u32.totalorder %s548_s14, %s544_s11  ;;  %p552_p12 = scmp.lt.u32.totalorder %s544_s11, %s733_s5 }
 0x109   : > { %p546_p7 = pnand %p545_p4, %p691_p5 }
 0x10a   : > { %p551_p11 = por %p550_p10, %p549_p9 }
 0x10b   : > { %p547_p8 = pneg %p546_p7 }
 0x10c   : > { %p553_p13 = por %p552_p12, %p551_p11 }
 0x10e   : > { %p554_p0 = pnand %p553_p13, %p547_p8 }
 0x110   : > { %557 = shalt.err (!%p554_p0)
}
 0x111   : > { %486 = dma.vmem_to_hbm [thread:$0]  (%p691_p5), %s735_s28, 16, %s733_s5, %s335_s6   ;;  %v317_v27 = vsel %vm300_vm1, %v315_v25, 2147483647  ;;  %v318_v28 = vsel %vm300_vm1, %v316_v26, 2147483647 }
 0x112   : > { %vm319_vm5 = vcmp.lt.s32.totalorder %v317_v27, %v318_v28  ;;  %s199_s29 = scalar_lea.vmem [#allocation4], %s724_s22  ;;  %s768_s6 = scalar_lea.hbm %s816_s4, %s456_s23 }
 0x113   : > { %v320_v29 = vsel %vm319_vm5, %v317_v27, %v318_v28  ;;  %s364_s30 = sshll.u32 %s199_s29, 4  ;;  %s339_s7 = scalar_lea.sflag [#allocation5], %s724_s22  ;;  %s770_s30 = int_to_ptr.vmem [resolvable:$true] %s364_s30 }
 0x114   : > { %v321_v30 = vrot.slane %v320_v29, 4  ;;  %s558_s8 = scalar_lea.vmem %s770_s30, 16  ;;  %s627_s9 = smov [#allocation4]  }
 0x115   : > { %p559_p1 = scmp.ne.s32.totalorder %s770_s30, %s558_s8  ;;  %s562_s19 = sshll.u32 %s627_s9, 4  ;;  %s563_s19 = int_to_ptr.vmem [resolvable:$false] %s562_s19 }
 0x116   : > { %vm322_vm6 = vcmp.lt.s32.totalorder %v320_v29, %v321_v30  ;;  %s564_s10 = scalar_lea.vmem %s563_s19, 32  ;;  %p565_p4 = scmp.lt.s32.totalorder %s770_s30, %s563_s19 }
 0x117   : > { %v323_v31 = vsel %vm322_vm6, %v320_v29, %v321_v30  ;;  %p560_p2 = pnand %p559_p1, %p691_p5  ;;  %p566_p7 = scmp.lt.s32.totalorder %s564_s10, %s558_s8 }
 0x118   : > { %v324_v32 = vrot.slane %v323_v31, 2 }
 0x119   : > { %p561_p3 = pneg %p560_p2  ;;  %p567_p8 = por %p566_p7, %p565_p4 }
 0x11a   : > { %vm325_vm7 = vcmp.lt.s32.totalorder %v323_v31, %v324_v32 }
 0x11b   : > { %v326_v33 = vsel %vm325_vm7, %v323_v31, %v324_v32  ;;  %p568_p9 = pnand %p567_p8, %p561_p3 }
 0x11c   : > { %v327_v34 = vrot.slane %v326_v33, 1 }
 0x11e   : > { %vm328_vm8 = vcmp.lt.s32.totalorder %v326_v33, %v327_v34 }
 0x11f   : > { %v329_v35 = vsel %vm328_vm8, %v326_v33, %v327_v34 }
 0x120   : > { %v332_v36 = vcvt.s32.f32 %v329_v35 }
 0x122   : > { %333 = vst.msk [vmem:[%s199_s29] sm:$0x1] %vm330_vm2, %v332_v36 }
 0x123   : > { %571 = shalt.err (!%p568_p9)
}
 0x124   : > { %s572_s22 = scalar_lea.hbm %s768_s6, 16  ;;  %s576_s12 = scalar_lea.hbm %s816_s4, 32 }
 0x125   : > { %p573_p10 = scmp.ne.s32.totalorder %s768_s6, %s572_s22  ;;  %p577_p13 = scmp.lt.u32.totalorder %s768_s6, %s816_s4 }
 0x126   : > { %p578_p0 = scmp.lt.u32.totalorder %s576_s12, %s572_s22  ;;  %p580_p2 = scmp.lt.u32.totalorder %s572_s22, %s768_s6 }
 0x127   : > { %p574_p11 = pnand %p573_p10, %p691_p5 }
 0x128   : > { %p579_p1 = por %p578_p0, %p577_p13 }
 0x129   : > { %p575_p12 = pneg %p574_p11 }
 0x12a   : > { %p581_p3 = por %p580_p2, %p579_p1 }
 0x12c   : > { %p582_p4 = pnand %p581_p3, %p575_p12 }
 0x12e   : > { %585 = shalt.err (!%p582_p4)
}
 0x12f   : > { %487 = dma.vmem_to_hbm [thread:$0]  (%p691_p5), %s770_s30, 16, %s768_s6, %s339_s7  }
 0x130 PF: > { %p497_p7 = scmp.ge.s32.totalorder %s624_s18, 2  ;;  %s376_s20 = sand.u32 1, %s612_s15  }
 0x131   : > { %s377_s27 = scalar_lea.sflag [#allocation3], %s376_s20 }
 0x132   : > { %p491_p8 = pnand %p497_p7, %p695_p6 }
 0x134   : > { %603 = dma.done.wait (!%p491_p8), %s377_s27, 16  }
 0x135   : > { %605 = vsyncadd (!%p491_p8), %s377_s27, 4294967280  ;;  %s385_s29 = scalar_lea.sflag [#allocation5], %s376_s20 }
 0x136   : > { %607 = dma.done.wait (!%p491_p8), %s385_s29, 16  }
 0x137   : > { %609 = vsyncadd (!%p491_p8), %s385_s29, 4294967280  ;;  %p18_p5 = scmp.ge.s32.totalorder %s678_s21, 4   ;;  %s819_s15 = smov %s616_s16 }
 0x138   : > { %s820_s16 = smov %s620_s17  ;;  %s821_s17 = smov %s689_s24 }
 0x139   : > { %s822_s18 = smov %s678_s21  ;;  %20 = sbr.rel (!%p18_p5) target bundleno = 5 (0x5), region = 84 }
 0x140   :  { %389 = vsyncpa [#allocation3], 1 }
 0x141   :  { %391 = vsyncpa [#allocation3 + $0x1], 1 }
 0x142   :  { %392 = vsyncpa [#allocation5], 1 }
 0x143   :  { %394 = vsyncpa [#allocation5 + $0x1], 1 }

</bundles_post_ra>
